<compile_context>
chip_gen: v7x
topology: tpu7x:2x2x1
jax: 0.10.0
libtpu: 0.0.40
codegen_flags: <defaults>
</compile_context>

<pallas_src>
import functools

import jax
import jax.numpy as jnp
from jax.experimental import pallas as pl
from jax.experimental.pallas import tpu as pltpu

LANE = 128


def _round_up(n, m):
    return ((n + m - 1) // m) * m


# ----------------------------------------------------------------------------
# Fused RedNet forward kernel: one grid program == one image.
# ----------------------------------------------------------------------------
def _rednet_kernel(xs_ref, bd_ref, cb_ref, proj_ref, w1_ref, b1_ref, w2_ref, b2_ref,
                   o_ref, *, H, W, C_in, C_out, KH, KW, mm_dtype):
    """
    xs_ref   : (1, KW, H+2, W*C_in)       padded image, one column-shifted slab per kw tap
    bd_ref   : (KH*KW, W*C_in, W*C_out)   block-diagonal per-tap conv weights
    cb_ref   : (1, W*C_out)               conv bias tiled across W
    proj_ref : (H, W*C_out, R_pad)        proj_mat rows permuted from NCHW to (h, w, c) order
    w1_ref   : (R_pad, HID_pad),  b1_ref : (1, HID_pad)
    w2_ref   : (HID_pad, NC_pad), b2_ref : (1, NC_pad)
    o_ref    : (1, 1, NC_pad)
    """
    # ---- premodel: Conv2d(3x3, pad=1) + ReLU, as 9 accumulated matmuls in VMEM --------
    def tap(t):
        i, j = divmod(t, KW)
        win = xs_ref[0, j, i:i + H, :]                          # (H, W*C_in)
        return jnp.dot(win.astype(mm_dtype),
                       bd_ref[t].astype(mm_dtype),
                       preferred_element_type=jnp.float32)

    acc = tap(0)
    for t in range(1, KH * KW):
        acc = acc + tap(t)
    conv = jnp.maximum(acc + cb_ref[...], 0.0)                  # (H, W*C_out), lane-dense

    # ---- proj_model: flat_NCHW @ proj_mat, via row-permuted weights (no transpose) ----
    conv_mm = conv.astype(mm_dtype)
    red = jnp.dot(conv_mm[0:1, :], proj_ref[0].astype(mm_dtype),
                  preferred_element_type=jnp.float32)           # (1, R_pad)
    for h in range(1, H):
        red = red + jnp.dot(conv_mm[h:h + 1, :],
                            proj_ref[h].astype(mm_dtype),
                            preferred_element_type=jnp.float32)

    # ---- inout_map: Linear + ReLU + Linear (all N dims lane-dense, padded to 128) ------
    hid = jnp.dot(red.astype(mm_dtype), w1_ref[...].astype(mm_dtype),
                  preferred_element_type=jnp.float32) + b1_ref[...]
    hid = jnp.maximum(hid, 0.0)
    out = jnp.dot(hid.astype(mm_dtype), w2_ref[...].astype(mm_dtype),
                  preferred_element_type=jnp.float32) + b2_ref[...]
    o_ref[0] = out.astype(o_ref.dtype)                          # full 128-lane store


# ----------------------------------------------------------------------------
# Wrapper: trace-time weight-side layout prep + single pallas_call
# ----------------------------------------------------------------------------
def rednet_forward(x, p, matmul_dtype=jnp.float32):
    B, C_in, H, W = x.shape
    C_out, C_in2, KH, KW = p["conv_w"].shape
    assert C_in2 == C_in and KH == 3 and KW == 3
    F = C_out * H * W
    R = p["proj_mat"].shape[1]
    HID = p["fc1_w"].shape[1]
    NC = p["fc2_w"].shape[1]
    assert p["proj_mat"].shape[0] == F

    Rp = _round_up(R, LANE)
    HIDp = _round_up(HID, LANE)
    NCp = _round_up(NC, LANE)

    f32 = jnp.float32

    # ----- weight-side prep (trace-time; pure layout plumbing, no activation transposes)
    eye_w = jnp.eye(W, dtype=f32)
    # Per-tap block-diagonal weights: tap (i, j) -> kron(I_W, conv_w[:, :, i, j].T)
    bd = jnp.stack([jnp.kron(eye_w, p["conv_w"][:, :, i, j].T.astype(f32))
                    for i in range(KH) for j in range(KW)], axis=0)       # (9, W*C_in, W*C_out)
    conv_b = jnp.tile(p["conv_b"].astype(f32), W).reshape(1, W * C_out)   # (1, W*C_out)
    # Permute proj_mat rows from NCHW flatten order (c, h, w) to kernel order (h, w, c),
    # and zero-pad the reduced dimension to a lane-dense width.
    proj_p = (p["proj_mat"].astype(f32)
              .reshape(C_out, H, W, R).transpose(1, 2, 0, 3).reshape(H, W * C_out, R))
    proj_p = jnp.pad(proj_p, ((0, 0), (0, 0), (0, Rp - R)))               # (H, W*C_out, Rp)
    fc1_w = jnp.pad(p["fc1_w"].astype(f32), ((0, Rp - R), (0, HIDp - HID)))
    fc1_b = jnp.pad(p["fc1_b"].astype(f32), (0, HIDp - HID)).reshape(1, HIDp)
    fc2_w = jnp.pad(p["fc2_w"].astype(f32), ((0, HIDp - HID), (0, NCp - NC)))
    fc2_b = jnp.pad(p["fc2_b"].astype(f32), (0, NCp - NC)).reshape(1, NCp)

    # ----- input layout: pad once, 3 column-shifted (H+2, W*C_in) slabs per image ------
    xr = jnp.pad(x.astype(f32), ((0, 0), (0, 0), (1, 1), (1, 1))).transpose(0, 2, 3, 1)
    x_shift = jnp.stack([xr[:, :, j:j + W, :].reshape(B, H + 2, W * C_in)
                         for j in range(KW)], axis=1)                      # (B, KW, H+2, W*C_in)

    kernel = functools.partial(_rednet_kernel, H=H, W=W, C_in=C_in, C_out=C_out,
                               KH=KH, KW=KW, mm_dtype=matmul_dtype)

    out3 = pl.pallas_call(
        kernel,
        out_shape=jax.ShapeDtypeStruct((B, 1, NCp), f32),
        grid=(B,),
        in_specs=[
            pl.BlockSpec((1, KW, H + 2, W * C_in), lambda b: (b, 0, 0, 0)),
            pl.BlockSpec((KH * KW, W * C_in, W * C_out), lambda b: (0, 0, 0)),
            pl.BlockSpec((1, W * C_out), lambda b: (0, 0)),
            pl.BlockSpec((H, W * C_out, Rp), lambda b: (0, 0, 0)),
            pl.BlockSpec((Rp, HIDp), lambda b: (0, 0)),
            pl.BlockSpec((1, HIDp), lambda b: (0, 0)),
            pl.BlockSpec((HIDp, NCp), lambda b: (0, 0)),
            pl.BlockSpec((1, NCp), lambda b: (0, 0)),
        ],
        out_specs=pl.BlockSpec((1, 1, NCp), lambda b: (b, 0, 0)),
        compiler_params=pltpu.CompilerParams(
            dimension_semantics=("parallel",),
            vmem_limit_bytes=32 * 1024 * 1024),
    )(x_shift, bd, conv_b, proj_p, fc1_w, fc1_b, fc2_w, fc2_b)

    return out3[:, 0, :NC]                                      # (B, n_classes)


# ----------------------------------------------------------------------------
# Pure-JAX reference
# ----------------------------------------------------------------------------
def rednet_reference(x, p):
    conv = jax.lax.conv_general_dilated(
        x, p["conv_w"], window_strides=(1, 1), padding="SAME",
        dimension_numbers=("NCHW", "OIHW", "NCHW"))
    conv = jnp.maximum(conv + p["conv_b"].reshape(1, -1, 1, 1), 0.0)
    flat = conv.reshape(x.shape[0], -1)
    red = flat @ p["proj_mat"]
    h = jnp.maximum(red @ p["fc1_w"] + p["fc1_b"], 0.0)
    return h @ p["fc2_w"] + p["fc2_b"]


# ----------------------------------------------------------------------------
if __name__ == "__main__":
    key = jax.random.PRNGKey(0)
    ks = jax.random.split(key, 8)

    B, C_in, H, W = 2, 4, 16, 16
    C_out = 8
    F = C_out * H * W          # 2048 flattened premodel features
    R = 64                     # reduced dimension (proj_mat columns)
    HID = 32                   # hidden width of the inout FNN
    n_classes = 10

    params = {
        "conv_w": 0.1 * jax.random.normal(ks[0], (C_out, C_in, 3, 3), jnp.float32),
        "conv_b": 0.1 * jax.random.normal(ks[1], (C_out,), jnp.float32),
        "proj_mat": 0.05 * jax.random.normal(ks[2], (F, R), jnp.float32),
        "fc1_w": 0.1 * jax.random.normal(ks[3], (R, HID), jnp.float32),
        "fc1_b": 0.1 * jax.random.normal(ks[4], (HID,), jnp.float32),
        "fc2_w": 0.1 * jax.random.normal(ks[5], (HID, n_classes), jnp.float32),
        "fc2_b": 0.1 * jax.random.normal(ks[6], (n_classes,), jnp.float32),
    }

    x = jax.random.normal(ks[7], (B, C_in, H, W), jnp.float32)

    fwd = jax.jit(rednet_forward)
    out = jax.block_until_ready(fwd(x, params))
    ref = jax.block_until_ready(rednet_reference(x, params))

    assert out.shape == (B, n_classes)
    assert jnp.allclose(out, ref, atol=1e-4, rtol=1e-4), "Pallas output mismatch"
    print("KERNEL_OK")
</pallas_src>

<mosaic_0001>
module attributes {stable_mosaic.version = 11 : i64} {
  func.func @_rednet_kernel(%arg0: i32, %arg1: memref<1x3x18x64xf32, #tpu.memory_space<vmem>>, %arg2: memref<9x64x128xf32, #tpu.memory_space<vmem>>, %arg3: memref<1x128xf32, #tpu.memory_space<vmem>>, %arg4: memref<16x128x128xf32, #tpu.memory_space<vmem>>, %arg5: memref<128x128xf32, #tpu.memory_space<vmem>>, %arg6: memref<1x128xf32, #tpu.memory_space<vmem>>, %arg7: memref<128x128xf32, #tpu.memory_space<vmem>>, %arg8: memref<1x128xf32, #tpu.memory_space<vmem>>, %arg9: memref<1x1x128xf32, #tpu.memory_space<vmem>>) attributes {dimension_semantics = [#tpu.dimension_semantics<parallel>], iteration_bounds = array<i64: 2>, scalar_prefetch = 0 : i64, scratch_operands = 0 : i64, tpu.core_type = #tpu.core_type<tc>, window_params = [{transform_indices = @transform_0, window_bounds = array<i64: 1, 3, 18, 64>}, {pipeline_mode = #tpu.pipeline_mode<synchronous>, transform_indices = @transform_1, window_bounds = array<i64: 9, 64, 128>}, {pipeline_mode = #tpu.pipeline_mode<synchronous>, transform_indices = @transform_2, window_bounds = array<i64: 1, 128>}, {pipeline_mode = #tpu.pipeline_mode<synchronous>, transform_indices = @transform_3, window_bounds = array<i64: 16, 128, 128>}, {pipeline_mode = #tpu.pipeline_mode<synchronous>, transform_indices = @transform_4, window_bounds = array<i64: 128, 128>}, {pipeline_mode = #tpu.pipeline_mode<synchronous>, transform_indices = @transform_5, window_bounds = array<i64: 1, 128>}, {pipeline_mode = #tpu.pipeline_mode<synchronous>, transform_indices = @transform_6, window_bounds = array<i64: 128, 128>}, {pipeline_mode = #tpu.pipeline_mode<synchronous>, transform_indices = @transform_7, window_bounds = array<i64: 1, 128>}, {transform_indices = @transform_8, window_bounds = array<i64: 1, 1, 128>}]} {
    %c0 = arith.constant 0 : index
    %c0_0 = arith.constant 0 : index
    %c0_1 = arith.constant 0 : index
    %c0_2 = arith.constant 0 : index
    %0 = vector.load %arg1[%c0, %c0_0, %c0_1, %c0_2] : memref<1x3x18x64xf32, #tpu.memory_space<vmem>>, vector<1x1x16x64xf32>
    %1 = vector.shape_cast %0 : vector<1x1x16x64xf32> to vector<16x64xf32>
    %c0_3 = arith.constant 0 : index
    %c0_4 = arith.constant 0 : index
    %c0_5 = arith.constant 0 : index
    %2 = vector.load %arg2[%c0_3, %c0_4, %c0_5] : memref<9x64x128xf32, #tpu.memory_space<vmem>>, vector<1x64x128xf32>
    %3 = vector.shape_cast %2 : vector<1x64x128xf32> to vector<64x128xf32>
    %cst = arith.constant dense<0.000000e+00> : vector<16x128xf32>
    %4 = tpu.matmul %1, %3, %cst {dimension_numbers = #tpu.dot_dimension_numbers<[1], [0], [0], [1], [0, 0, 1, 1], [], []>} : vector<16x64xf32>, vector<64x128xf32>, vector<16x128xf32> -> vector<16x128xf32>
    %c0_6 = arith.constant 0 : index
    %c1 = arith.constant 1 : index
    %c0_7 = arith.constant 0 : index
    %c0_8 = arith.constant 0 : index
    %5 = vector.load %arg1[%c0_6, %c1, %c0_7, %c0_8] : memref<1x3x18x64xf32, #tpu.memory_space<vmem>>, vector<1x1x16x64xf32>
    %6 = vector.shape_cast %5 : vector<1x1x16x64xf32> to vector<16x64xf32>
    %c1_9 = arith.constant 1 : index
    %c0_10 = arith.constant 0 : index
    %c0_11 = arith.constant 0 : index
    %7 = vector.load %arg2[%c1_9, %c0_10, %c0_11] : memref<9x64x128xf32, #tpu.memory_space<vmem>>, vector<1x64x128xf32>
    %8 = vector.shape_cast %7 : vector<1x64x128xf32> to vector<64x128xf32>
    %cst_12 = arith.constant dense<0.000000e+00> : vector<16x128xf32>
    %9 = tpu.matmul %6, %8, %cst_12 {dimension_numbers = #tpu.dot_dimension_numbers<[1], [0], [0], [1], [0, 0, 1, 1], [], []>} : vector<16x64xf32>, vector<64x128xf32>, vector<16x128xf32> -> vector<16x128xf32>
    %10 = arith.addf %4, %9 : vector<16x128xf32>
    %c0_13 = arith.constant 0 : index
    %c2 = arith.constant 2 : index
    %c0_14 = arith.constant 0 : index
    %c0_15 = arith.constant 0 : index
    %11 = vector.load %arg1[%c0_13, %c2, %c0_14, %c0_15] : memref<1x3x18x64xf32, #tpu.memory_space<vmem>>, vector<1x1x16x64xf32>
    %12 = vector.shape_cast %11 : vector<1x1x16x64xf32> to vector<16x64xf32>
    %c2_16 = arith.constant 2 : index
    %c0_17 = arith.constant 0 : index
    %c0_18 = arith.constant 0 : index
    %13 = vector.load %arg2[%c2_16, %c0_17, %c0_18] : memref<9x64x128xf32, #tpu.memory_space<vmem>>, vector<1x64x128xf32>
    %14 = vector.shape_cast %13 : vector<1x64x128xf32> to vector<64x128xf32>
    %cst_19 = arith.constant dense<0.000000e+00> : vector<16x128xf32>
    %15 = tpu.matmul %12, %14, %cst_19 {dimension_numbers = #tpu.dot_dimension_numbers<[1], [0], [0], [1], [0, 0, 1, 1], [], []>} : vector<16x64xf32>, vector<64x128xf32>, vector<16x128xf32> -> vector<16x128xf32>
    %16 = arith.addf %10, %15 : vector<16x128xf32>
    %c0_20 = arith.constant 0 : index
    %c0_21 = arith.constant 0 : index
    %c1_22 = arith.constant 1 : index
    %c0_23 = arith.constant 0 : index
    %17 = vector.load %arg1[%c0_20, %c0_21, %c1_22, %c0_23] : memref<1x3x18x64xf32, #tpu.memory_space<vmem>>, vector<1x1x16x64xf32>
    %18 = vector.shape_cast %17 : vector<1x1x16x64xf32> to vector<16x64xf32>
    %c3 = arith.constant 3 : index
    %c0_24 = arith.constant 0 : index
    %c0_25 = arith.constant 0 : index
    %19 = vector.load %arg2[%c3, %c0_24, %c0_25] : memref<9x64x128xf32, #tpu.memory_space<vmem>>, vector<1x64x128xf32>
    %20 = vector.shape_cast %19 : vector<1x64x128xf32> to vector<64x128xf32>
    %cst_26 = arith.constant dense<0.000000e+00> : vector<16x128xf32>
    %21 = tpu.matmul %18, %20, %cst_26 {dimension_numbers = #tpu.dot_dimension_numbers<[1], [0], [0], [1], [0, 0, 1, 1], [], []>} : vector<16x64xf32>, vector<64x128xf32>, vector<16x128xf32> -> vector<16x128xf32>
    %22 = arith.addf %16, %21 : vector<16x128xf32>
    %c0_27 = arith.constant 0 : index
    %c1_28 = arith.constant 1 : index
    %c1_29 = arith.constant 1 : index
    %c0_30 = arith.constant 0 : index
    %23 = vector.load %arg1[%c0_27, %c1_28, %c1_29, %c0_30] : memref<1x3x18x64xf32, #tpu.memory_space<vmem>>, vector<1x1x16x64xf32>
    %24 = vector.shape_cast %23 : vector<1x1x16x64xf32> to vector<16x64xf32>
    %c4 = arith.constant 4 : index
    %c0_31 = arith.constant 0 : index
    %c0_32 = arith.constant 0 : index
    %25 = vector.load %arg2[%c4, %c0_31, %c0_32] : memref<9x64x128xf32, #tpu.memory_space<vmem>>, vector<1x64x128xf32>
    %26 = vector.shape_cast %25 : vector<1x64x128xf32> to vector<64x128xf32>
    %cst_33 = arith.constant dense<0.000000e+00> : vector<16x128xf32>
    %27 = tpu.matmul %24, %26, %cst_33 {dimension_numbers = #tpu.dot_dimension_numbers<[1], [0], [0], [1], [0, 0, 1, 1], [], []>} : vector<16x64xf32>, vector<64x128xf32>, vector<16x128xf32> -> vector<16x128xf32>
    %28 = arith.addf %22, %27 : vector<16x128xf32>
    %c0_34 = arith.constant 0 : index
    %c2_35 = arith.constant 2 : index
    %c1_36 = arith.constant 1 : index
    %c0_37 = arith.constant 0 : index
    %29 = vector.load %arg1[%c0_34, %c2_35, %c1_36, %c0_37] : memref<1x3x18x64xf32, #tpu.memory_space<vmem>>, vector<1x1x16x64xf32>
    %30 = vector.shape_cast %29 : vector<1x1x16x64xf32> to vector<16x64xf32>
    %c5 = arith.constant 5 : index
    %c0_38 = arith.constant 0 : index
    %c0_39 = arith.constant 0 : index
    %31 = vector.load %arg2[%c5, %c0_38, %c0_39] : memref<9x64x128xf32, #tpu.memory_space<vmem>>, vector<1x64x128xf32>
    %32 = vector.shape_cast %31 : vector<1x64x128xf32> to vector<64x128xf32>
    %cst_40 = arith.constant dense<0.000000e+00> : vector<16x128xf32>
    %33 = tpu.matmul %30, %32, %cst_40 {dimension_numbers = #tpu.dot_dimension_numbers<[1], [0], [0], [1], [0, 0, 1, 1], [], []>} : vector<16x64xf32>, vector<64x128xf32>, vector<16x128xf32> -> vector<16x128xf32>
    %34 = arith.addf %28, %33 : vector<16x128xf32>
    %c0_41 = arith.constant 0 : index
    %c0_42 = arith.constant 0 : index
    %c2_43 = arith.constant 2 : index
    %c0_44 = arith.constant 0 : index
    %35 = vector.load %arg1[%c0_41, %c0_42, %c2_43, %c0_44] : memref<1x3x18x64xf32, #tpu.memory_space<vmem>>, vector<1x1x16x64xf32>
    %36 = vector.shape_cast %35 : vector<1x1x16x64xf32> to vector<16x64xf32>
    %c6 = arith.constant 6 : index
    %c0_45 = arith.constant 0 : index
    %c0_46 = arith.constant 0 : index
    %37 = vector.load %arg2[%c6, %c0_45, %c0_46] : memref<9x64x128xf32, #tpu.memory_space<vmem>>, vector<1x64x128xf32>
    %38 = vector.shape_cast %37 : vector<1x64x128xf32> to vector<64x128xf32>
    %cst_47 = arith.constant dense<0.000000e+00> : vector<16x128xf32>
    %39 = tpu.matmul %36, %38, %cst_47 {dimension_numbers = #tpu.dot_dimension_numbers<[1], [0], [0], [1], [0, 0, 1, 1], [], []>} : vector<16x64xf32>, vector<64x128xf32>, vector<16x128xf32> -> vector<16x128xf32>
    %40 = arith.addf %34, %39 : vector<16x128xf32>
    %c0_48 = arith.constant 0 : index
    %c1_49 = arith.constant 1 : index
    %c2_50 = arith.constant 2 : index
    %c0_51 = arith.constant 0 : index
    %41 = vector.load %arg1[%c0_48, %c1_49, %c2_50, %c0_51] : memref<1x3x18x64xf32, #tpu.memory_space<vmem>>, vector<1x1x16x64xf32>
    %42 = vector.shape_cast %41 : vector<1x1x16x64xf32> to vector<16x64xf32>
    %c7 = arith.constant 7 : index
    %c0_52 = arith.constant 0 : index
    %c0_53 = arith.constant 0 : index
    %43 = vector.load %arg2[%c7, %c0_52, %c0_53] : memref<9x64x128xf32, #tpu.memory_space<vmem>>, vector<1x64x128xf32>
    %44 = vector.shape_cast %43 : vector<1x64x128xf32> to vector<64x128xf32>
    %cst_54 = arith.constant dense<0.000000e+00> : vector<16x128xf32>
    %45 = tpu.matmul %42, %44, %cst_54 {dimension_numbers = #tpu.dot_dimension_numbers<[1], [0], [0], [1], [0, 0, 1, 1], [], []>} : vector<16x64xf32>, vector<64x128xf32>, vector<16x128xf32> -> vector<16x128xf32>
    %46 = arith.addf %40, %45 : vector<16x128xf32>
    %c0_55 = arith.constant 0 : index
    %c2_56 = arith.constant 2 : index
    %c2_57 = arith.constant 2 : index
    %c0_58 = arith.constant 0 : index
    %47 = vector.load %arg1[%c0_55, %c2_56, %c2_57, %c0_58] : memref<1x3x18x64xf32, #tpu.memory_space<vmem>>, vector<1x1x16x64xf32>
    %48 = vector.shape_cast %47 : vector<1x1x16x64xf32> to vector<16x64xf32>
    %c8 = arith.constant 8 : index
    %c0_59 = arith.constant 0 : index
    %c0_60 = arith.constant 0 : index
    %49 = vector.load %arg2[%c8, %c0_59, %c0_60] : memref<9x64x128xf32, #tpu.memory_space<vmem>>, vector<1x64x128xf32>
    %50 = vector.shape_cast %49 : vector<1x64x128xf32> to vector<64x128xf32>
    %cst_61 = arith.constant dense<0.000000e+00> : vector<16x128xf32>
    %51 = tpu.matmul %48, %50, %cst_61 {dimension_numbers = #tpu.dot_dimension_numbers<[1], [0], [0], [1], [0, 0, 1, 1], [], []>} : vector<16x64xf32>, vector<64x128xf32>, vector<16x128xf32> -> vector<16x128xf32>
    %52 = arith.addf %46, %51 : vector<16x128xf32>
    %c0_62 = arith.constant 0 : index
    %c0_63 = arith.constant 0 : index
    %53 = vector.load %arg3[%c0_62, %c0_63] : memref<1x128xf32, #tpu.memory_space<vmem>>, vector<1x128xf32>
    %54 = vector.broadcast %53 : vector<1x128xf32> to vector<16x128xf32>
    %55 = arith.addf %52, %54 : vector<16x128xf32>
    %cst_64 = arith.constant 0.000000e+00 : f32
    %56 = vector.broadcast %cst_64 : f32 to vector<16x128xf32>
    %57 = arith.maximumf %55, %56 : vector<16x128xf32>
    %58 = vector.extract_strided_slice %57 {offsets = [0, 0], sizes = [1, 128], strides = [1, 1]} : vector<16x128xf32> to vector<1x128xf32>
    %c0_65 = arith.constant 0 : index
    %c0_66 = arith.constant 0 : index
    %c0_67 = arith.constant 0 : index
    %59 = vector.load %arg4[%c0_65, %c0_66, %c0_67] : memref<16x128x128xf32, #tpu.memory_space<vmem>>, vector<1x128x128xf32>
    %60 = vector.shape_cast %59 : vector<1x128x128xf32> to vector<128x128xf32>
    %cst_68 = arith.constant dense<0.000000e+00> : vector<1x128xf32>
    %61 = tpu.matmul %58, %60, %cst_68 {dimension_numbers = #tpu.dot_dimension_numbers<[1], [0], [0], [1], [0, 0, 1, 1], [], []>} : vector<1x128xf32>, vector<128x128xf32>, vector<1x128xf32> -> vector<1x128xf32>
    %62 = vector.extract_strided_slice %57 {offsets = [1, 0], sizes = [1, 128], strides = [1, 1]} : vector<16x128xf32> to vector<1x128xf32>
    %c1_69 = arith.constant 1 : index
    %c0_70 = arith.constant 0 : index
    %c0_71 = arith.constant 0 : index
    %63 = vector.load %arg4[%c1_69, %c0_70, %c0_71] : memref<16x128x128xf32, #tpu.memory_space<vmem>>, vector<1x128x128xf32>
    %64 = vector.shape_cast %63 : vector<1x128x128xf32> to vector<128x128xf32>
    %cst_72 = arith.constant dense<0.000000e+00> : vector<1x128xf32>
    %65 = tpu.matmul %62, %64, %cst_72 {dimension_numbers = #tpu.dot_dimension_numbers<[1], [0], [0], [1], [0, 0, 1, 1], [], []>} : vector<1x128xf32>, vector<128x128xf32>, vector<1x128xf32> -> vector<1x128xf32>
    %66 = arith.addf %61, %65 : vector<1x128xf32>
    %67 = vector.extract_strided_slice %57 {offsets = [2, 0], sizes = [1, 128], strides = [1, 1]} : vector<16x128xf32> to vector<1x128xf32>
    %c2_73 = arith.constant 2 : index
    %c0_74 = arith.constant 0 : index
    %c0_75 = arith.constant 0 : index
    %68 = vector.load %arg4[%c2_73, %c0_74, %c0_75] : memref<16x128x128xf32, #tpu.memory_space<vmem>>, vector<1x128x128xf32>
    %69 = vector.shape_cast %68 : vector<1x128x128xf32> to vector<128x128xf32>
    %cst_76 = arith.constant dense<0.000000e+00> : vector<1x128xf32>
    %70 = tpu.matmul %67, %69, %cst_76 {dimension_numbers = #tpu.dot_dimension_numbers<[1], [0], [0], [1], [0, 0, 1, 1], [], []>} : vector<1x128xf32>, vector<128x128xf32>, vector<1x128xf32> -> vector<1x128xf32>
    %71 = arith.addf %66, %70 : vector<1x128xf32>
    %72 = vector.extract_strided_slice %57 {offsets = [3, 0], sizes = [1, 128], strides = [1, 1]} : vector<16x128xf32> to vector<1x128xf32>
    %c3_77 = arith.constant 3 : index
    %c0_78 = arith.constant 0 : index
    %c0_79 = arith.constant 0 : index
    %73 = vector.load %arg4[%c3_77, %c0_78, %c0_79] : memref<16x128x128xf32, #tpu.memory_space<vmem>>, vector<1x128x128xf32>
    %74 = vector.shape_cast %73 : vector<1x128x128xf32> to vector<128x128xf32>
    %cst_80 = arith.constant dense<0.000000e+00> : vector<1x128xf32>
    %75 = tpu.matmul %72, %74, %cst_80 {dimension_numbers = #tpu.dot_dimension_numbers<[1], [0], [0], [1], [0, 0, 1, 1], [], []>} : vector<1x128xf32>, vector<128x128xf32>, vector<1x128xf32> -> vector<1x128xf32>
    %76 = arith.addf %71, %75 : vector<1x128xf32>
    %77 = vector.extract_strided_slice %57 {offsets = [4, 0], sizes = [1, 128], strides = [1, 1]} : vector<16x128xf32> to vector<1x128xf32>
    %c4_81 = arith.constant 4 : index
    %c0_82 = arith.constant 0 : index
    %c0_83 = arith.constant 0 : index
    %78 = vector.load %arg4[%c4_81, %c0_82, %c0_83] : memref<16x128x128xf32, #tpu.memory_space<vmem>>, vector<1x128x128xf32>
    %79 = vector.shape_cast %78 : vector<1x128x128xf32> to vector<128x128xf32>
    %cst_84 = arith.constant dense<0.000000e+00> : vector<1x128xf32>
    %80 = tpu.matmul %77, %79, %cst_84 {dimension_numbers = #tpu.dot_dimension_numbers<[1], [0], [0], [1], [0, 0, 1, 1], [], []>} : vector<1x128xf32>, vector<128x128xf32>, vector<1x128xf32> -> vector<1x128xf32>
    %81 = arith.addf %76, %80 : vector<1x128xf32>
    %82 = vector.extract_strided_slice %57 {offsets = [5, 0], sizes = [1, 128], strides = [1, 1]} : vector<16x128xf32> to vector<1x128xf32>
    %c5_85 = arith.constant 5 : index
    %c0_86 = arith.constant 0 : index
    %c0_87 = arith.constant 0 : index
    %83 = vector.load %arg4[%c5_85, %c0_86, %c0_87] : memref<16x128x128xf32, #tpu.memory_space<vmem>>, vector<1x128x128xf32>
    %84 = vector.shape_cast %83 : vector<1x128x128xf32> to vector<128x128xf32>
    %cst_88 = arith.constant dense<0.000000e+00> : vector<1x128xf32>
    %85 = tpu.matmul %82, %84, %cst_88 {dimension_numbers = #tpu.dot_dimension_numbers<[1], [0], [0], [1], [0, 0, 1, 1], [], []>} : vector<1x128xf32>, vector<128x128xf32>, vector<1x128xf32> -> vector<1x128xf32>
    %86 = arith.addf %81, %85 : vector<1x128xf32>
    %87 = vector.extract_strided_slice %57 {offsets = [6, 0], sizes = [1, 128], strides = [1, 1]} : vector<16x128xf32> to vector<1x128xf32>
    %c6_89 = arith.constant 6 : index
    %c0_90 = arith.constant 0 : index
    %c0_91 = arith.constant 0 : index
    %88 = vector.load %arg4[%c6_89, %c0_90, %c0_91] : memref<16x128x128xf32, #tpu.memory_space<vmem>>, vector<1x128x128xf32>
    %89 = vector.shape_cast %88 : vector<1x128x128xf32> to vector<128x128xf32>
    %cst_92 = arith.constant dense<0.000000e+00> : vector<1x128xf32>
    %90 = tpu.matmul %87, %89, %cst_92 {dimension_numbers = #tpu.dot_dimension_numbers<[1], [0], [0], [1], [0, 0, 1, 1], [], []>} : vector<1x128xf32>, vector<128x128xf32>, vector<1x128xf32> -> vector<1x128xf32>
    %91 = arith.addf %86, %90 : vector<1x128xf32>
    %92 = vector.extract_strided_slice %57 {offsets = [7, 0], sizes = [1, 128], strides = [1, 1]} : vector<16x128xf32> to vector<1x128xf32>
    %c7_93 = arith.constant 7 : index
    %c0_94 = arith.constant 0 : index
    %c0_95 = arith.constant 0 : index
    %93 = vector.load %arg4[%c7_93, %c0_94, %c0_95] : memref<16x128x128xf32, #tpu.memory_space<vmem>>, vector<1x128x128xf32>
    %94 = vector.shape_cast %93 : vector<1x128x128xf32> to vector<128x128xf32>
    %cst_96 = arith.constant dense<0.000000e+00> : vector<1x128xf32>
    %95 = tpu.matmul %92, %94, %cst_96 {dimension_numbers = #tpu.dot_dimension_numbers<[1], [0], [0], [1], [0, 0, 1, 1], [], []>} : vector<1x128xf32>, vector<128x128xf32>, vector<1x128xf32> -> vector<1x128xf32>
    %96 = arith.addf %91, %95 : vector<1x128xf32>
    %97 = vector.extract_strided_slice %57 {offsets = [8, 0], sizes = [1, 128], strides = [1, 1]} : vector<16x128xf32> to vector<1x128xf32>
    %c8_97 = arith.constant 8 : index
    %c0_98 = arith.constant 0 : index
    %c0_99 = arith.constant 0 : index
    %98 = vector.load %arg4[%c8_97, %c0_98, %c0_99] : memref<16x128x128xf32, #tpu.memory_space<vmem>>, vector<1x128x128xf32>
    %99 = vector.shape_cast %98 : vector<1x128x128xf32> to vector<128x128xf32>
    %cst_100 = arith.constant dense<0.000000e+00> : vector<1x128xf32>
    %100 = tpu.matmul %97, %99, %cst_100 {dimension_numbers = #tpu.dot_dimension_numbers<[1], [0], [0], [1], [0, 0, 1, 1], [], []>} : vector<1x128xf32>, vector<128x128xf32>, vector<1x128xf32> -> vector<1x128xf32>
    %101 = arith.addf %96, %100 : vector<1x128xf32>
    %102 = vector.extract_strided_slice %57 {offsets = [9, 0], sizes = [1, 128], strides = [1, 1]} : vector<16x128xf32> to vector<1x128xf32>
    %c9 = arith.constant 9 : index
    %c0_101 = arith.constant 0 : index
    %c0_102 = arith.constant 0 : index
    %103 = vector.load %arg4[%c9, %c0_101, %c0_102] : memref<16x128x128xf32, #tpu.memory_space<vmem>>, vector<1x128x128xf32>
    %104 = vector.shape_cast %103 : vector<1x128x128xf32> to vector<128x128xf32>
    %cst_103 = arith.constant dense<0.000000e+00> : vector<1x128xf32>
    %105 = tpu.matmul %102, %104, %cst_103 {dimension_numbers = #tpu.dot_dimension_numbers<[1], [0], [0], [1], [0, 0, 1, 1], [], []>} : vector<1x128xf32>, vector<128x128xf32>, vector<1x128xf32> -> vector<1x128xf32>
    %106 = arith.addf %101, %105 : vector<1x128xf32>
    %107 = vector.extract_strided_slice %57 {offsets = [10, 0], sizes = [1, 128], strides = [1, 1]} : vector<16x128xf32> to vector<1x128xf32>
    %c10 = arith.constant 10 : index
    %c0_104 = arith.constant 0 : index
    %c0_105 = arith.constant 0 : index
    %108 = vector.load %arg4[%c10, %c0_104, %c0_105] : memref<16x128x128xf32, #tpu.memory_space<vmem>>, vector<1x128x128xf32>
    %109 = vector.shape_cast %108 : vector<1x128x128xf32> to vector<128x128xf32>
    %cst_106 = arith.constant dense<0.000000e+00> : vector<1x128xf32>
    %110 = tpu.matmul %107, %109, %cst_106 {dimension_numbers = #tpu.dot_dimension_numbers<[1], [0], [0], [1], [0, 0, 1, 1], [], []>} : vector<1x128xf32>, vector<128x128xf32>, vector<1x128xf32> -> vector<1x128xf32>
    %111 = arith.addf %106, %110 : vector<1x128xf32>
    %112 = vector.extract_strided_slice %57 {offsets = [11, 0], sizes = [1, 128], strides = [1, 1]} : vector<16x128xf32> to vector<1x128xf32>
    %c11 = arith.constant 11 : index
    %c0_107 = arith.constant 0 : index
    %c0_108 = arith.constant 0 : index
    %113 = vector.load %arg4[%c11, %c0_107, %c0_108] : memref<16x128x128xf32, #tpu.memory_space<vmem>>, vector<1x128x128xf32>
    %114 = vector.shape_cast %113 : vector<1x128x128xf32> to vector<128x128xf32>
    %cst_109 = arith.constant dense<0.000000e+00> : vector<1x128xf32>
    %115 = tpu.matmul %112, %114, %cst_109 {dimension_numbers = #tpu.dot_dimension_numbers<[1], [0], [0], [1], [0, 0, 1, 1], [], []>} : vector<1x128xf32>, vector<128x128xf32>, vector<1x128xf32> -> vector<1x128xf32>
    %116 = arith.addf %111, %115 : vector<1x128xf32>
    %117 = vector.extract_strided_slice %57 {offsets = [12, 0], sizes = [1, 128], strides = [1, 1]} : vector<16x128xf32> to vector<1x128xf32>
    %c12 = arith.constant 12 : index
    %c0_110 = arith.constant 0 : index
    %c0_111 = arith.constant 0 : index
    %118 = vector.load %arg4[%c12, %c0_110, %c0_111] : memref<16x128x128xf32, #tpu.memory_space<vmem>>, vector<1x128x128xf32>
    %119 = vector.shape_cast %118 : vector<1x128x128xf32> to vector<128x128xf32>
    %cst_112 = arith.constant dense<0.000000e+00> : vector<1x128xf32>
    %120 = tpu.matmul %117, %119, %cst_112 {dimension_numbers = #tpu.dot_dimension_numbers<[1], [0], [0], [1], [0, 0, 1, 1], [], []>} : vector<1x128xf32>, vector<128x128xf32>, vector<1x128xf32> -> vector<1x128xf32>
    %121 = arith.addf %116, %120 : vector<1x128xf32>
    %122 = vector.extract_strided_slice %57 {offsets = [13, 0], sizes = [1, 128], strides = [1, 1]} : vector<16x128xf32> to vector<1x128xf32>
    %c13 = arith.constant 13 : index
    %c0_113 = arith.constant 0 : index
    %c0_114 = arith.constant 0 : index
    %123 = vector.load %arg4[%c13, %c0_113, %c0_114] : memref<16x128x128xf32, #tpu.memory_space<vmem>>, vector<1x128x128xf32>
    %124 = vector.shape_cast %123 : vector<1x128x128xf32> to vector<128x128xf32>
    %cst_115 = arith.constant dense<0.000000e+00> : vector<1x128xf32>
    %125 = tpu.matmul %122, %124, %cst_115 {dimension_numbers = #tpu.dot_dimension_numbers<[1], [0], [0], [1], [0, 0, 1, 1], [], []>} : vector<1x128xf32>, vector<128x128xf32>, vector<1x128xf32> -> vector<1x128xf32>
    %126 = arith.addf %121, %125 : vector<1x128xf32>
    %127 = vector.extract_strided_slice %57 {offsets = [14, 0], sizes = [1, 128], strides = [1, 1]} : vector<16x128xf32> to vector<1x128xf32>
    %c14 = arith.constant 14 : index
    %c0_116 = arith.constant 0 : index
    %c0_117 = arith.constant 0 : index
    %128 = vector.load %arg4[%c14, %c0_116, %c0_117] : memref<16x128x128xf32, #tpu.memory_space<vmem>>, vector<1x128x128xf32>
    %129 = vector.shape_cast %128 : vector<1x128x128xf32> to vector<128x128xf32>
    %cst_118 = arith.constant dense<0.000000e+00> : vector<1x128xf32>
    %130 = tpu.matmul %127, %129, %cst_118 {dimension_numbers = #tpu.dot_dimension_numbers<[1], [0], [0], [1], [0, 0, 1, 1], [], []>} : vector<1x128xf32>, vector<128x128xf32>, vector<1x128xf32> -> vector<1x128xf32>
    %131 = arith.addf %126, %130 : vector<1x128xf32>
    %132 = vector.extract_strided_slice %57 {offsets = [15, 0], sizes = [1, 128], strides = [1, 1]} : vector<16x128xf32> to vector<1x128xf32>
    %c15 = arith.constant 15 : index
    %c0_119 = arith.constant 0 : index
    %c0_120 = arith.constant 0 : index
    %133 = vector.load %arg4[%c15, %c0_119, %c0_120] : memref<16x128x128xf32, #tpu.memory_space<vmem>>, vector<1x128x128xf32>
    %134 = vector.shape_cast %133 : vector<1x128x128xf32> to vector<128x128xf32>
    %cst_121 = arith.constant dense<0.000000e+00> : vector<1x128xf32>
    %135 = tpu.matmul %132, %134, %cst_121 {dimension_numbers = #tpu.dot_dimension_numbers<[1], [0], [0], [1], [0, 0, 1, 1], [], []>} : vector<1x128xf32>, vector<128x128xf32>, vector<1x128xf32> -> vector<1x128xf32>
    %136 = arith.addf %131, %135 : vector<1x128xf32>
    %c0_122 = arith.constant 0 : index
    %c0_123 = arith.constant 0 : index
    %137 = vector.load %arg5[%c0_122, %c0_123] : memref<128x128xf32, #tpu.memory_space<vmem>>, vector<128x128xf32>
    %cst_124 = arith.constant dense<0.000000e+00> : vector<1x128xf32>
    %138 = tpu.matmul %136, %137, %cst_124 {dimension_numbers = #tpu.dot_dimension_numbers<[1], [0], [0], [1], [0, 0, 1, 1], [], []>} : vector<1x128xf32>, vector<128x128xf32>, vector<1x128xf32> -> vector<1x128xf32>
    %c0_125 = arith.constant 0 : index
    %c0_126 = arith.constant 0 : index
    %139 = vector.load %arg6[%c0_125, %c0_126] : memref<1x128xf32, #tpu.memory_space<vmem>>, vector<1x128xf32>
    %140 = arith.addf %138, %139 : vector<1x128xf32>
    %cst_127 = arith.constant 0.000000e+00 : f32
    %141 = vector.broadcast %cst_127 : f32 to vector<1x128xf32>
    %142 = arith.maximumf %140, %141 : vector<1x128xf32>
    %c0_128 = arith.constant 0 : index
    %c0_129 = arith.constant 0 : index
    %143 = vector.load %arg7[%c0_128, %c0_129] : memref<128x128xf32, #tpu.memory_space<vmem>>, vector<128x128xf32>
    %cst_130 = arith.constant dense<0.000000e+00> : vector<1x128xf32>
    %144 = tpu.matmul %142, %143, %cst_130 {dimension_numbers = #tpu.dot_dimension_numbers<[1], [0], [0], [1], [0, 0, 1, 1], [], []>} : vector<1x128xf32>, vector<128x128xf32>, vector<1x128xf32> -> vector<1x128xf32>
    %c0_131 = arith.constant 0 : index
    %c0_132 = arith.constant 0 : index
    %145 = vector.load %arg8[%c0_131, %c0_132] : memref<1x128xf32, #tpu.memory_space<vmem>>, vector<1x128xf32>
    %146 = arith.addf %144, %145 : vector<1x128xf32>
    %c0_133 = arith.constant 0 : index
    %c0_134 = arith.constant 0 : index
    %c0_135 = arith.constant 0 : index
    %147 = vector.load %arg9[%c0_133, %c0_134, %c0_135] : memref<1x1x128xf32, #tpu.memory_space<vmem>>, vector<1x1x128xf32>
    %148 = vector.shape_cast %147 : vector<1x1x128xf32> to vector<1x128xf32>
    %149 = vector.shape_cast %146 : vector<1x128xf32> to vector<1x1x128xf32>
    tpu.vector_store %arg9[%c0_133, %c0_134, %c0_135], %149 {strides = array<i32>} : memref<1x1x128xf32, #tpu.memory_space<vmem>>, vector<1x1x128xf32>,
    return
  }
  func.func @transform_0(%arg0: i32) -> (i32, i32, i32, i32) {
    %c0_i32 = arith.constant 0 : i32
    %c0_i32_0 = arith.constant 0 : i32
    %c0_i32_1 = arith.constant 0 : i32
    %c0_i32_2 = arith.constant 0 : i32
    return %arg0, %c0_i32, %c0_i32_0, %c0_i32_1 : i32, i32, i32, i32
  }
  func.func @transform_1(%arg0: i32) -> (i32, i32, i32) {
    %c0_i32 = arith.constant 0 : i32
    %c0_i32_0 = arith.constant 0 : i32
    %c0_i32_1 = arith.constant 0 : i32
    %c0_i32_2 = arith.constant 0 : i32
    return %c0_i32, %c0_i32_0, %c0_i32_1 : i32, i32, i32
  }
  func.func @transform_2(%arg0: i32) -> (i32, i32) {
    %c0_i32 = arith.constant 0 : i32
    %c0_i32_0 = arith.constant 0 : i32
    %c0_i32_1 = arith.constant 0 : i32
    return %c0_i32, %c0_i32_0 : i32, i32
  }
  func.func @transform_3(%arg0: i32) -> (i32, i32, i32) {
    %c0_i32 = arith.constant 0 : i32
    %c0_i32_0 = arith.constant 0 : i32
    %c0_i32_1 = arith.constant 0 : i32
    %c0_i32_2 = arith.constant 0 : i32
    return %c0_i32, %c0_i32_0, %c0_i32_1 : i32, i32, i32
  }
  func.func @transform_4(%arg0: i32) -> (i32, i32) {
    %c0_i32 = arith.constant 0 : i32
    %c0_i32_0 = arith.constant 0 : i32
    %c0_i32_1 = arith.constant 0 : i32
    return %c0_i32, %c0_i32_0 : i32, i32
  }
  func.func @transform_5(%arg0: i32) -> (i32, i32) {
    %c0_i32 = arith.constant 0 : i32
    %c0_i32_0 = arith.constant 0 : i32
    %c0_i32_1 = arith.constant 0 : i32
    return %c0_i32, %c0_i32_0 : i32, i32
  }
  func.func @transform_6(%arg0: i32) -> (i32, i32) {
    %c0_i32 = arith.constant 0 : i32
    %c0_i32_0 = arith.constant 0 : i32
    %c0_i32_1 = arith.constant 0 : i32
    return %c0_i32, %c0_i32_0 : i32, i32
  }
  func.func @transform_7(%arg0: i32) -> (i32, i32) {
    %c0_i32 = arith.constant 0 : i32
    %c0_i32_0 = arith.constant 0 : i32
    %c0_i32_1 = arith.constant 0 : i32
    return %c0_i32, %c0_i32_0 : i32, i32
  }
  func.func @transform_8(%arg0: i32) -> (i32, i32, i32) {
    %c0_i32 = arith.constant 0 : i32
    %c0_i32_0 = arith.constant 0 : i32
    %c0_i32_1 = arith.constant 0 : i32
    return %arg0, %c0_i32, %c0_i32_0 : i32, i32, i32
  }
}

</mosaic_0001>

<bundles_post_ra>
// kernel: tile.8
= control target key start
LH: loop header
LB: loop body
LE: loop exit
PB: predicated region body
PF: predicated region fallthrough
CT: control target
= control target key end

     0   :  { %s28_s0 = inlined_call_operand.vmem [shape: f32[8], index: 0, kind: input, shape index: {}]   ;;  %s29_s1 = inlined_call_operand.vmem [shape: f32[16,8], index: 1, kind: output, shape index: {}]  }
   0x1   :  { %v4_v0 = vld [vmem:[%s28_s0] ss:$0 sm:$0xff] }
   0x2   :  { %5 = vst [vmem:[%s29_s1] sm:$0xff] %v4_v0  ;;  %8 = vst [vmem:[%s29_s1 + $0x8] sm:$0xff] %v4_v0 }

// kernel: tile.9
= control target key start
LH: loop header
LB: loop body
LE: loop exit
PB: predicated region body
PF: predicated region fallthrough
CT: control target
= control target key end

     0   :  { %s131_s10 = smov 120   ;;  %s132_s11 = smov 104   ;;  %vm3_vm0 = vcmask 64512   ;;  %vm9_vm1 = vcmask 1048512   ;;  %vm15_vm2 = vcmask 982912   ;;  %vm21_vm3 = vcmask 917312   ;;  %s207_s0 = inlined_call_operand.vmem [shape: f32[16,8], index: 0, kind: input, shape index: {}]   ;;  %s208_s1 = inlined_call_operand.vmem [shape: f32[1,128], index: 1, kind: output, shape index: {}]  }
   0x1   :  { %v101_v0 = vld [vmem:[%s207_s0 + $0xf] sm:$0x1]   ;;  %v103_v1 = vld [vmem:[%s207_s0 + $0xd] sm:$0x1]   ;;  %v102_v2 = vld [vmem:[%s207_s0 + $0xe] sm:$0x1]  }
   0x2   :  { %7 = vrot.lane.b32.xlu0 %v101_v0, %s131_s10  ;;  %19 = vrot.lane.b32.xlu1 %v103_v1, %s132_s11  ;;  %v104_v3 = vld [vmem:[%s207_s0 + $0xc] sm:$0x1]   ;;  %s133_s16 = smov 112   ;;  %s134_s17 = smov 96   ;;  %v105_v4 = vld [vmem:[%s207_s0 + $0xb] sm:$0x1]  }
   0x3   :  { %v106_v5 = vld [vmem:[%s207_s0 + $0xa] sm:$0x1]   ;;  %v2_v6 = vld [vmem:[%s207_s0] sm:$0x1]   ;;  %s135_s24 = smov 88   ;;  %s136_s25 = smov 80  }
   0x4   :  { %4 = vst.msk [vmem:[#allocation0] sm:$0x1] %vm3_vm0, %v2_v6   ;;  %v107_v7 = vld [vmem:[%s207_s0 + $0x9] sm:$0x1]   ;;  %v108_v8 = vld [vmem:[%s207_s0 + $0x8] sm:$0x1]  }
   0x5   :  { %s137_s30 = smov 72   ;;  %s138_s2 = smov 64   ;;  %v109_v9 = vld [vmem:[%s207_s0 + $0x7] sm:$0x1]   ;;  %v110_v10 = vld [vmem:[%s207_s0 + $0x6] sm:$0x1]  }
   0x6   :  { %13 = vrot.lane.b32.xlu0 %v102_v2, %s133_s16  ;;  %25 = vrot.lane.b32.xlu1 %v104_v3, %s134_s17  ;;  %s139_s7 = smov 56   ;;  %s140_s8 = smov 48   ;;  %v111_v11 = vld [vmem:[%s207_s0 + $0x5] sm:$0x1]   ;;  %v112_v12 = vld [vmem:[%s207_s0 + $0x4] sm:$0x1]  }
   0x7   :  { %s141_s13 = smov 40   ;;  %s142_s14 = smov 32   ;;  %v113_v13 = vld [vmem:[%s207_s0 + $0x3] sm:$0x1]   ;;  %v114_v14 = vld [vmem:[%s207_s0 + $0x2] sm:$0x1]  }
   0x8   :  { %s143_s19 = smov 24   ;;  %s144_s20 = smov 16   ;;  %v115_v15 = vld [vmem:[%s207_s0 + $0x1] sm:$0x1]   ;;  %vm27_vm4 = vcmask 851712   ;;  %vm33_vm5 = vcmask 786112  }
   0x9   :  { %s145_s0 = smov 8   ;;  %vm39_vm6 = vcmask 720512   ;;  %vm45_vm7 = vcmask 654912   ;;  %vm51_vm8 = vcmask 589312   ;;  %vm57_vm9 = vcmask 523712  }
   0xa   :  { %31 = vrot.lane.b32.xlu0 %v105_v4, %s135_s24  ;;  %37 = vrot.lane.b32.xlu1 %v106_v5, %s136_s25  ;;  %vm63_vm10 = vcmask 458112   ;;  %vm69_vm11 = vcmask 392512   ;;  %vm75_vm12 = vcmask 326912   ;;  %vm81_vm13 = vcmask 261312  }
   0xb   :  { %vm87_vm14 = vcmask 195712   ;;  %vm93_vm15 = vcmask 130112  }
   0xe   :  { %43 = vrot.lane.b32.xlu0 %v107_v7, %s137_s30  ;;  %49 = vrot.lane.b32.xlu1 %v108_v8, %s138_s2 }
  0x12   :  { %55 = vrot.lane.b32.xlu0 %v109_v9, %s139_s7  ;;  %61 = vrot.lane.b32.xlu1 %v110_v10, %s140_s8 }
  0x16   :  { %67 = vrot.lane.b32.xlu0 %v111_v11, %s141_s13  ;;  %73 = vrot.lane.b32.xlu1 %v112_v12, %s142_s14 }
  0x1a   :  { %79 = vrot.lane.b32.xlu0 %v113_v13, %s143_s19  ;;  %85 = vrot.lane.b32.xlu1 %v114_v14, %s144_s20 }
  0x1e   :  { %91 = vrot.lane.b32.xlu0 %v115_v15, %s145_s0 }
  0x74   :  { %v8_v16 = vpop.permute.xlu0 %7   ;;  %v20_v17 = vpop.permute.xlu1 %19  }
  0x75   :  { %10 = vst.msk [vmem:[#allocation0] sm:$0x1] %vm9_vm1, %v8_v16  }
  0x78   :  { %v14_v18 = vpop.permute.xlu0 %13   ;;  %v26_v19 = vpop.permute.xlu1 %25  }
  0x79   :  { %16 = vst.msk [vmem:[#allocation0] sm:$0x1] %vm15_vm2, %v14_v18  }
  0x7a   :  { %22 = vst.msk [vmem:[#allocation0] sm:$0x1] %vm21_vm3, %v20_v17  }
  0x7b   :  { %28 = vst.msk [vmem:[#allocation0] sm:$0x1] %vm27_vm4, %v26_v19  }
  0x7c   :  { %v32_v20 = vpop.permute.xlu0 %31   ;;  %v38_v21 = vpop.permute.xlu1 %37  }
  0x7d   :  { %34 = vst.msk [vmem:[#allocation0] sm:$0x1] %vm33_vm5, %v32_v20  }
  0x7e   :  { %40 = vst.msk [vmem:[#allocation0] sm:$0x1] %vm39_vm6, %v38_v21  }
  0x80   :  { %v44_v22 = vpop.permute.xlu0 %43   ;;  %v50_v23 = vpop.permute.xlu1 %49  }
  0x81   :  { %46 = vst.msk [vmem:[#allocation0] sm:$0x1] %vm45_vm7, %v44_v22  }
  0x82   :  { %52 = vst.msk [vmem:[#allocation0] sm:$0x1] %vm51_vm8, %v50_v23  }
  0x84   :  { %v56_v24 = vpop.permute.xlu0 %55   ;;  %v62_v25 = vpop.permute.xlu1 %61  }
  0x85   :  { %58 = vst.msk [vmem:[#allocation0] sm:$0x1] %vm57_vm9, %v56_v24  }
  0x86   :  { %64 = vst.msk [vmem:[#allocation0] sm:$0x1] %vm63_vm10, %v62_v25  }
  0x88   :  { %v68_v26 = vpop.permute.xlu0 %67   ;;  %v74_v27 = vpop.permute.xlu1 %73  }
  0x89   :  { %70 = vst.msk [vmem:[#allocation0] sm:$0x1] %vm69_vm11, %v68_v26  }
  0x8a   :  { %76 = vst.msk [vmem:[#allocation0] sm:$0x1] %vm75_vm12, %v74_v27  }
  0x8c   :  { %v80_v28 = vpop.permute.xlu0 %79   ;;  %v86_v29 = vpop.permute.xlu1 %85  }
  0x8d   :  { %82 = vst.msk [vmem:[#allocation0] sm:$0x1] %vm81_vm13, %v80_v28  }
  0x8e   :  { %88 = vst.msk [vmem:[#allocation0] sm:$0x1] %vm87_vm14, %v86_v29  }
  0x90   :  { %v92_v30 = vpop.permute.xlu0 %91  }
  0x91   :  { %94 = vst.msk [vmem:[#allocation0] sm:$0x1] %vm93_vm15, %v92_v30  }
  0x98   :  { %v98_v31 = vld [vmem:[#allocation0] sm:$0x1] }
  0x99   :  { %100 = vst [vmem:[%s208_s1] sm:$0x1] %v98_v31 }

// kernel: rednet_forward.1
= control target key start
LH: loop header
LB: loop body
LE: loop exit
PB: predicated region body
PF: predicated region fallthrough
CT: control target
= control target key end

     0   :  { %13 = vsyncpa [#allocation3], 0  ;;  %s6584_s0 = inlined_call_operand.vmem [shape: f32[2,3,18,64], index: 0, kind: input, shape index: {}]   ;;  %s6585_s1 = inlined_call_operand.vmem [shape: f32[9,64,128], index: 1, kind: input, shape index: {}]   ;;  %s6586_s2 = inlined_call_operand.vmem [shape: f32[1,128], index: 2, kind: input, shape index: {}]   ;;  %s6587_s3 = inlined_call_operand.vmem [shape: f32[16,128,128], index: 3, kind: input, shape index: {}]   ;;  %s6588_s4 = inlined_call_operand.vmem [shape: f32[128,128], index: 4, kind: input, shape index: {}]   ;;  %s6589_s5 = inlined_call_operand.vmem [shape: f32[1,128], index: 5, kind: input, shape index: {}]   ;;  %s6590_s6 = inlined_call_operand.vmem [shape: f32[128,128], index: 6, kind: input, shape index: {}]   ;;  %s6591_s7 = inlined_call_operand.vmem [shape: f32[1,128], index: 7, kind: input, shape index: {}]   ;;  %s6592_s8 = inlined_call_operand.hbm [shape: f32[2,1,128], index: 8, kind: output, shape index: {}]  }
   0x1   :  { %15 = vsyncpa [#allocation3 + $0x1], 0  ;;  %s5154_s27 = smov 0   ;;  %s5156_s28 = smov 0  }
   0x2   :  { %s5158_s29 = smov 0   ;;  %s5160_s30 = smov 0  }
   0x3 LB: > { %s5175_s9 = sadd.s32 4294967295, %s5103_s30   ;;  %s2837_s10 = sadd.s32 4294967294, %s5103_s30   ;;  %s5103_s30 = sphi %s5160_s30, %s6598_s30   ;;  %s5099_s29 = sphi %s5158_s29, %s6597_s29   ;;  %s5095_s28 = sphi %s5156_s28, %s6596_s28   ;;  %s5091_s27 = sphi %s5154_s27, %s6595_s27  }
   0x4   : > { %s5179_s11 = sadd.s32 1, %s5103_s30   ;;  %s201_s12 = sadd.s32 1, %s5099_s29 }
   0x5   : > { %s198_s13 = ssub.s32 %s5103_s30, %s5179_s11  ;;  %p211_p0 = scmp.ne.s32.totalorder %s5099_s29, %s5095_s28 }
   0x6   : > { %p199_p1 = scmp.eq.s32.totalorder %s198_s13, 0  ;;  %p212_p2 = scmp.eq.s32.totalorder %s5175_s9, 1 }
   0x7   : > { %p217_p3 = scmp.ne.s32.totalorder %s5095_s28, %s5091_s27  ;;  %p218_p4 = scmp.eq.s32.totalorder %s2837_s10, 1 }
   0x8   : > { %s5190_s14 = scalar_select %p199_p1, %s5099_s29, %s201_s12  }
   0x9   : > { %p5192_p5 = por %p212_p2, %p211_p0  ;;  %p5196_p6 = por %p218_p4, %p217_p3 }
   0xa   : > { %p2840_p7 = scmp.ge.s32.totalorder %s5103_s30, 1  ;;  %p265_p8 = scmp.lt.s32.totalorder %s5103_s30, 3 }
   0xc   : > { %p266_p9 = pnand %p2840_p7, %p265_p8 }
   0xd   : > { %v2844_v0 = vld [vmem:[%s6585_s1 + $0x40] sm:$0xff] (!%p266_p9)  ;;  %v2845_v1 = vld [vmem:[%s6585_s1 + $0x48] sm:$0xff] (!%p266_p9)  ;;  %v2846_v2 = vld [vmem:[%s6585_s1 + $0x50] sm:$0xff] (!%p266_p9)  ;;  %p298_p10 = scmp.lt.s32.totalorder (!%p266_p9), %s5175_s9, 1  ;;  %vm325_vm0 = vcmask (!%p266_p9), 523264   ;;  %v5105_v24 = vmov (!%p266_p9), 0.0|0.0  }
   0xe   : > { %269 = sbr.rel (%p266_p9) target bundleno = 1357 (0x54d), region = 52  ;;  %v4377_v3 = vpack.c.bf16 (!%p266_p9), %v2845_v1, %v2844_v0  ;;  %v2847_v4 = vld [vmem:[%s6585_s1 + $0x58] sm:$0xff] (!%p266_p9)  ;;  %v2848_v6 = vld [vmem:[%s6585_s1 + $0x60] sm:$0xff] (!%p266_p9)  ;;  %v2849_v7 = vld [vmem:[%s6585_s1 + $0x68] sm:$0xff] (!%p266_p9)  ;;  %4641 = vmatprep.subr.bf16.mxu1 (!%p266_p9), %v5105_v24  ;;  %vm5106_vm1 = vmmov (!%p266_p9), 0   ;;  %s3177_s20 = sshll.u32 (!%p266_p9), %s5175_s9, 4 }
   0xf   : > { %v4381_v5 = vpack.c.bf16 (!%p266_p9), %v2847_v4, %v2846_v2  ;;  %v4385_v8 = vpack.c.bf16 (!%p266_p9), %v2849_v7, %v2848_v6  ;;  %v2850_v9 = vld [vmem:[%s6585_s1 + $0x70] sm:$0xff] (!%p266_p9)  ;;  %v2851_v10 = vld [vmem:[%s6585_s1 + $0x78] sm:$0xff] (!%p266_p9)  ;;  %v305_v13 = vld [vmem:[%s6585_s1] sm:$0xff] (!%p266_p9)  ;;  %s6542_s26 = scalar_lea.hbm (!%p266_p9), %s6592_s8, %s3177_s20 }
  0x10   : > { %4378 = vmatprep.subr.bf16.mxu0 (!%p266_p9), %v4377_v3  ;;  %v4389_v12 = vpack.c.bf16 (!%p266_p9), %v2851_v10, %v2850_v9  ;;  %v306_v14 = vld [vmem:[%s6585_s1 + $0x8] sm:$0xff] (!%p266_p9)  ;;  %v307_v16 = vld [vmem:[%s6585_s1 + $0x10] sm:$0xff] (!%p266_p9)  ;;  %v308_v17 = vld [vmem:[%s6585_s1 + $0x18] sm:$0xff] (!%p266_p9) }
  0x11   : > { %4380 = vmatpush3.bf16.msra.mxu0 (!%p266_p9), %v4377_v3  ;;  %v4393_v15 = vpack.c.bf16 (!%p266_p9), %v306_v14, %v305_v13  ;;  %v4397_v19 = vpack.c.bf16 (!%p266_p9), %v308_v17, %v307_v16  ;;  %v309_v21 = vld [vmem:[%s6585_s1 + $0x20] sm:$0xff] (!%p266_p9)  ;;  %v310_v22 = vld [vmem:[%s6585_s1 + $0x28] sm:$0xff] (!%p266_p9)  ;;  %v311_v25 = vld [vmem:[%s6585_s1 + $0x30] sm:$0xff] (!%p266_p9) }
  0x12   : > { %4382 = vmatprep.subr.bf16.mxu0 (!%p266_p9), %v4381_v5  ;;  %v4401_v23 = vpack.c.bf16 (!%p266_p9), %v310_v22, %v309_v21  ;;  %v312_v26 = vld [vmem:[%s6585_s1 + $0x38] sm:$0xff] (!%p266_p9)  ;;  %v2858_v28 = vld [vmem:[%s6585_s1 + $0x80] sm:$0xff] (!%p266_p9)  ;;  %v2859_v29 = vld [vmem:[%s6585_s1 + $0x88] sm:$0xff] (!%p266_p9) }
  0x13   : > { %v4405_v27 = vpack.c.bf16 (!%p266_p9), %v312_v26, %v311_v25  ;;  %v4409_v30 = vpack.c.bf16 (!%p266_p9), %v2859_v29, %v2858_v28  ;;  %v2860_v31 = vld [vmem:[%s6585_s1 + $0x90] sm:$0xff] (!%p266_p9)  ;;  %v2861_v32 = vld [vmem:[%s6585_s1 + $0x98] sm:$0xff] (!%p266_p9)  ;;  %v3001_v33 = vld [vmem:[%s6587_s3 + $0x280] sm:$0xff] (!%p266_p9) }
  0x14   : > { %v3002_v34 = vld [vmem:[%s6587_s3 + $0x288] sm:$0xff] (!%p266_p9)  ;;  %v3003_v37 = vld [vmem:[%s6587_s3 + $0x290] sm:$0xff] (!%p266_p9)  ;;  %v3004_v38 = vld [vmem:[%s6587_s3 + $0x298] sm:$0xff] (!%p266_p9)  ;;  %v4413_v39 = vpack.c.bf16 (!%p266_p9), %v2861_v32, %v2860_v31 }
  0x15   : > { %s299_s13 = scalar_select %p298_p10, %s5175_s9, 1  ;;  %4384 = vmatpush3.bf16.msra.mxu0 %v4381_v5  ;;  %v4642_v36 = vpack.c.bf16 %v3002_v34, %v3001_v33  ;;  %v2862_v41 = vld [vmem:[%s6585_s1 + $0xa0] sm:$0xff]  ;;  %v2863_v42 = vld [vmem:[%s6585_s1 + $0xa8] sm:$0xff]  ;;  %v4645_v43 = vpack.c.bf16 %v3004_v38, %v3003_v37  ;;  %v2864_v47 = vld [vmem:[%s6585_s1 + $0xb0] sm:$0xff] }
  0x16   : > { %4386 = vmatprep.subr.bf16.mxu0 %v4385_v8  ;;  %v3005_v44 = vld [vmem:[%s6587_s3 + $0x2a0] sm:$0xff]  ;;  %v3006_v45 = vld [vmem:[%s6587_s3 + $0x2a8] sm:$0xff]  ;;  %v4417_v46 = vpack.c.bf16 %v2863_v42, %v2862_v41  ;;  %v2865_v48 = vld [vmem:[%s6585_s1 + $0xb8] sm:$0xff]  ;;  %s5108_s9 = smov [#allocation2]  }
  0x17   : > { %s4998_s17 = smul.u32 72, %s299_s13  ;;  %4643 = vmatpush3.bf16.msra.mxu1 %v4642_v36  ;;  %v4648_v49 = vpack.c.bf16 %v3006_v45, %v3005_v44  ;;  %v3007_v50 = vld [vmem:[%s6587_s3 + $0x2b0] sm:$0xff]  ;;  %v3008_v51 = vld [vmem:[%s6587_s3 + $0x2b8] sm:$0xff]  ;;  %v4421_v52 = vpack.c.bf16 %v2865_v48, %v2864_v47  ;;  %v2868_v53 = vld [vmem:[%s6585_s1 + $0xc0] sm:$0xff]  ;;  %s5045_s13 = sshll.u32 %s5108_s9, 4  ;;  %s5046_s13 = int_to_ptr.vmem [resolvable:$false] %s5045_s13 }
  0x18   : > { %4644 = vmatprep.subr.bf16.mxu1 %v5105_v24  ;;  %v2869_v54 = vld [vmem:[%s6585_s1 + $0xc8] sm:$0xff]  ;;  %v4651_v55 = vpack.c.bf16 %v3008_v51, %v3007_v50  ;;  %v3009_v56 = vld [vmem:[%s6587_s3 + $0x2c0] sm:$0xff]  ;;  %v2870_v59 = vld [vmem:[%s6585_s1 + $0xd0] sm:$0xff] }
  0x19   : > { %s5231_s24 = scalar_lea.vmem %s6584_s0, %s4998_s17  ;;  %4388 = vmatpush3.bf16.msra.mxu0 %v4385_v8  ;;  %v3010_v57 = vld [vmem:[%s6587_s3 + $0x2c8] sm:$0xff]  ;;  %v4425_v58 = vpack.c.bf16 %v2869_v54, %v2868_v53  ;;  %v2871_v60 = vld [vmem:[%s6585_s1 + $0xd8] sm:$0xff]  ;;  %v3011_v62 = vld [vmem:[%s6587_s3 + $0x2d0] sm:$0xff]  ;;  %s5047_s17 = scalar_lea.vmem %s5046_s13, 32 }
  0x1a   : > { %v2842_v11 = vld [vmem:[%s5231_s24 + $0x18] sm:$0xff]  ;;  %4390 = vmatprep.subr.bf16.mxu0 %v4389_v12  ;;  %v2843_v18 = vld [vmem:[%s5231_s24 + $0x20] sm:$0xff]  ;;  %v304_v35 = vld [vmem:[%s5231_s24 + $0x8] sm:$0xff]  ;;  %v4654_v61 = vpack.c.bf16 %v3010_v57, %v3009_v56  ;;  %v4429_v1 = vpack.c.bf16 %v2871_v60, %v2870_v59 }
  0x1b   : > { %3592 = vmatprep.mubr.msk.f32.mxu0 %vm325_vm0, %v2842_v11  ;;  %v303_v20 = vld [vmem:[%s5231_s24] sm:$0xff]  ;;  %v2856_v40 = vld [vmem:[%s5231_s24 + $0x30] sm:$0xff]  ;;  %4646 = vmatpush3.bf16.msra.mxu1 %v4645_v43  ;;  %v3012_v63 = vld [vmem:[%s6587_s3 + $0x2d8] sm:$0xff] }
  0x1c   : > { %4647 = vmatprep.subr.bf16.mxu1 %v5105_v24  ;;  %v2857_v0 = vld [vmem:[%s5231_s24 + $0x38] sm:$0xff]  ;;  %v583_v2 = vld [vmem:[%s5231_s24 + $0x1] sm:$0xff]  ;;  %v4657_v5 = vpack.c.bf16 %v3012_v63, %v3011_v62  ;;  %v2874_v7 = vld [vmem:[%s6585_s1 + $0xf0] sm:$0xff] }
  0x1d   : > { %4392 = vmatpush3.bf16.msra.mxu0 %v4389_v12  ;;  %v2872_v3 = vld [vmem:[%s6585_s1 + $0xe0] sm:$0xff]  ;;  %v2873_v4 = vld [vmem:[%s6585_s1 + $0xe8] sm:$0xff]  ;;  %v2875_v8 = vld [vmem:[%s6585_s1 + $0xf8] sm:$0xff] }
  0x1e   : > { %4394 = vmatprep.subr.bf16.mxu0 %v4393_v15  ;;  %v4433_v6 = vpack.c.bf16 %v2873_v4, %v2872_v3  ;;  %v4437_v9 = vpack.c.bf16 %v2875_v8, %v2874_v7  ;;  %v2880_v10 = vld [vmem:[%s6585_s1 + $0x100] sm:$0xff]  ;;  %v2881_v11 = vld [vmem:[%s6585_s1 + $0x108] sm:$0xff]  ;;  %v2882_v13 = vld [vmem:[%s6585_s1 + $0x110] sm:$0xff] }
  0x1f   : > { %4649 = vmatpush3.bf16.msra.mxu1 %v4648_v49  ;;  %v4441_v12 = vpack.c.bf16 %v2881_v11, %v2880_v10  ;;  %v2883_v14 = vld [vmem:[%s6585_s1 + $0x118] sm:$0xff]  ;;  %v2886_v21 = vld [vmem:[%s6585_s1 + $0x130] sm:$0xff]  ;;  %v2892_v25 = vld [vmem:[%s6585_s1 + $0x140] sm:$0xff] }
  0x20   : > { %3593 = vmatmul.mubr.msk.f32.vlgmr.msra.gmra.mrb[0].mxu0 %vm325_vm0, %v2843_v18  ;;  %4650 = vmatprep.subr.bf16.mxu1 %v5105_v24  ;;  %v4445_v16 = vpack.c.bf16 %v2883_v14, %v2882_v13  ;;  %v2878_v17 = vld [vmem:[%s5231_s24 + $0x19] sm:$0xff]  ;;  %v2893_v26 = vld [vmem:[%s6585_s1 + $0x148] sm:$0xff]  ;;  %v2894_v28 = vld [vmem:[%s6585_s1 + $0x150] sm:$0xff] }
  0x21   : > { %4396 = vmatpush3.bf16.msra.mxu0 %v4393_v15  ;;  %3611 = vmatprep.mubr.msk.f32.mxu0 %vm325_vm0, %v303_v20  ;;  %v584_v15 = vld [vmem:[%s5231_s24 + $0x9] sm:$0xff]  ;;  %v2884_v18 = vld [vmem:[%s6585_s1 + $0x120] sm:$0xff]  ;;  %v2887_v22 = vld [vmem:[%s6585_s1 + $0x138] sm:$0xff] }
  0x22   : > { %4398 = vmatprep.subr.bf16.mxu0 %v4397_v19  ;;  %v2895_v29 = vld [vmem:[%s6585_s1 + $0x158] sm:$0xff]  ;;  %v2896_v33 = vld [vmem:[%s6585_s1 + $0x160] sm:$0xff]  ;;  %v2897_v34 = vld [vmem:[%s6585_s1 + $0x168] sm:$0xff] }
  0x23   : > { %4652 = vmatpush3.bf16.msra.mxu1 %v4651_v55  ;;  %v4461_v31 = vpack.c.bf16 %v2895_v29, %v2894_v28  ;;  %v2890_v32 = vld [vmem:[%s5231_s24 + $0x31] sm:$0xff]  ;;  %v2891_v44 = vld [vmem:[%s5231_s24 + $0x39] sm:$0xff]  ;;  %v2907_v48 = vld [vmem:[%s6585_s1 + $0x1a8] sm:$0xff] }
  0x24   : > { %4653 = vmatprep.subr.bf16.mxu1 %v5105_v24  ;;  %v2898_v36 = vld [vmem:[%s6585_s1 + $0x170] sm:$0xff]  ;;  %v2899_v37 = vld [vmem:[%s6585_s1 + $0x178] sm:$0xff]  ;;  %v2906_v47 = vld [vmem:[%s6585_s1 + $0x1a0] sm:$0xff] }
  0x25   : > { %4400 = vmatpush3.bf16.msra.mxu0 %v4397_v19  ;;  %v2885_v19 = vld [vmem:[%s6585_s1 + $0x128] sm:$0xff]  ;;  %v4469_v38 = vpack.c.bf16 %v2899_v37, %v2898_v36  ;;  %v2904_v42 = vld [vmem:[%s6585_s1 + $0x190] sm:$0xff]  ;;  %v2905_v43 = vld [vmem:[%s6585_s1 + $0x198] sm:$0xff]  ;;  %v4481_v49 = vpack.c.bf16 %v2907_v48, %v2906_v47 }
  0x26   : > { %4402 = vmatprep.subr.bf16.mxu0 %v4401_v23  ;;  %v4449_v20 = vpack.c.bf16 %v2885_v19, %v2884_v18  ;;  %v4477_v45 = vpack.c.bf16 %v2905_v43, %v2904_v42  ;;  %v2908_v50 = vld [vmem:[%s6585_s1 + $0x1b0] sm:$0xff]  ;;  %v2909_v51 = vld [vmem:[%s6585_s1 + $0x1b8] sm:$0xff]  ;;  %v2914_v53 = vld [vmem:[%s6585_s1 + $0x1c0] sm:$0xff] }
  0x27   : > { %4655 = vmatpush3.bf16.msra.mxu1 %v4654_v61  ;;  %v2915_v54 = vld [vmem:[%s6585_s1 + $0x1c8] sm:$0xff]  ;;  %v2916_v56 = vld [vmem:[%s6585_s1 + $0x1d0] sm:$0xff]  ;;  %v2917_v57 = vld [vmem:[%s6585_s1 + $0x1d8] sm:$0xff] }
  0x28   : > { %4656 = vmatprep.subr.bf16.mxu1 %v5105_v24  ;;  %v4489_v55 = vpack.c.bf16 %v2915_v54, %v2914_v53  ;;  %v4493_v59 = vpack.c.bf16 %v2917_v57, %v2916_v56  ;;  %v2912_v60 = vld [vmem:[%s5231_s24 + $0x1a] sm:$0xff]  ;;  %v2919_v62 = vld [vmem:[%s6585_s1 + $0x1e8] sm:$0xff]  ;;  %v2924_v10 = vld [vmem:[%s5231_s24 + $0x32] sm:$0xff] }
  0x29   : > { %4404 = vmatpush3.bf16.msra.mxu0 %v4401_v23  ;;  %v4453_v23 = vpack.c.bf16 %v2887_v22, %v2886_v21  ;;  %v2918_v61 = vld [vmem:[%s6585_s1 + $0x1e0] sm:$0xff]  ;;  %v2927_v4 = vld [vmem:[%s6585_s1 + $0x208] sm:$0xff]  ;;  %v2929_v7 = vld [vmem:[%s6585_s1 + $0x218] sm:$0xff] }
  0x2a   : > { %4406 = vmatprep.subr.bf16.mxu0 %v4405_v27  ;;  %v4497_v63 = vpack.c.bf16 %v2919_v62, %v2918_v61  ;;  %v2926_v3 = vld [vmem:[%s6585_s1 + $0x200] sm:$0xff]  ;;  %v2932_v14 = vld [vmem:[%s6585_s1 + $0x230] sm:$0xff]  ;;  %v2938_v18 = vld [vmem:[%s6587_s3 + $0x88] sm:$0xff] }
  0x2b   : > { %4658 = vmatpush3.bf16.msra.mxu1 %v4657_v5  ;;  %v4505_v5 = vpack.c.bf16 %v2927_v4, %v2926_v3  ;;  %v2913_v8 = vld [vmem:[%s5231_s24 + $0x22] sm:$0xff]  ;;  %v2925_v19 = vld [vmem:[%s5231_s24 + $0x3a] sm:$0xff]  ;;  %v2939_v21 = vld [vmem:[%s6587_s3 + $0x90] sm:$0xff] }
  0x2c   : > { %4659 = vmatprep.subr.bf16.mxu1 %v5105_v24  ;;  %v2930_v11 = vld [vmem:[%s6585_s1 + $0x220] sm:$0xff]  ;;  %v2940_v22 = vld [vmem:[%s6587_s3 + $0x98] sm:$0xff]  ;;  %v2943_v28 = vld [vmem:[%s6587_s3 + $0xb0] sm:$0xff] }
  0x2d   : > { %4408 = vmatpush3.bf16.msra.mxu0 %v4405_v27  ;;  %v4457_v27 = vpack.c.bf16 %v2893_v26, %v2892_v25  ;;  %v2941_v25 = vld [vmem:[%s6587_s3 + $0xa0] sm:$0xff]  ;;  %v2942_v26 = vld [vmem:[%s6587_s3 + $0xa8] sm:$0xff]  ;;  %v2944_v29 = vld [vmem:[%s6587_s3 + $0xb8] sm:$0xff] }
  0x2e   : > { %4410 = vmatprep.subr.bf16.mxu0 %v4409_v30  ;;  %v2949_v37 = vld [vmem:[%s6587_s3 + $0xe0] sm:$0xff]  ;;  %v2951_v43 = vld [vmem:[%s6587_s3 + $0xf0] sm:$0xff]  ;;  %v3016_v47 = vld [vmem:[%s6587_s3 + $0x2f8] sm:$0xff] }
  0x2f   : > { %v1158_v54 = vld [vmem:[%s6587_s3] sm:$0xff]  ;;  %v1159_v56 = vld [vmem:[%s6587_s3 + $0x8] sm:$0xff]  ;;  %v1160_v62 = vld [vmem:[%s6587_s3 + $0x10] sm:$0xff] }
  0x30   : > { %3612 = vmatmul.mubr.msk.f32.vlgmr.msra.gmra.mrb[0].mxu0 %vm325_vm0, %v304_v35  ;;  %v4465_v35 = vpack.c.bf16 %v2897_v34, %v2896_v33  ;;  %v2947_v34 = vld [vmem:[%s6587_s3 + $0xd0] sm:$0xff]  ;;  %v3017_v57 = vld [vmem:[%s6587_s3 + $0x300] sm:$0xff]  ;;  %v3020_v3 = vld [vmem:[%s6587_s3 + $0x318] sm:$0xff] }
  0x31   : > { %4412 = vmatpush3.bf16.msra.mxu0 %v4409_v30  ;;  %3630 = vmatprep.mubr.msk.f32.mxu0 %vm325_vm0, %v2856_v40  ;;  %v2879_v30 = vld [vmem:[%s5231_s24 + $0x21] sm:$0xff] }
  0x32   : > { %4414 = vmatprep.subr.bf16.mxu0 %v4413_v39  ;;  %v2903_v40 = vld [vmem:[%s6585_s1 + $0x188] sm:$0xff] }
  0x35   : > { %4416 = vmatpush3.bf16.msra.mxu0 %v4413_v39  ;;  %v2902_v39 = vld [vmem:[%s6585_s1 + $0x180] sm:$0xff] }
  0x36   : > { %4418 = vmatprep.subr.bf16.mxu0 %v4417_v46  ;;  %v4473_v41 = vpack.c.bf16 %v2903_v40, %v2902_v39  ;;  %v3013_v39 = vld [vmem:[%s6587_s3 + $0x2e0] sm:$0xff] }
  0x39   : > { %4420 = vmatpush3.bf16.msra.mxu0 %v4417_v46  ;;  %v865_v46 = vld [vmem:[%s5231_s24 + $0x2] sm:$0xff] }
  0x3a   : > { %4422 = vmatprep.subr.bf16.mxu0 %v4421_v52 }
  0x3d   : > { %4424 = vmatpush3.bf16.msra.mxu0 %v4421_v52  ;;  %v4485_v52 = vpack.c.bf16 %v2909_v51, %v2908_v50  ;;  %v2936_v50 = vld [vmem:[%s6586_s2] ss:$0 sm:$0xff] }
  0x3e   : > { %4426 = vmatprep.subr.bf16.mxu0 %v4425_v58 }
  0x40   : > { %3631 = vmatmul.mubr.msk.f32.vlgmr.msra.gmra.mrb[0].mxu0 %vm325_vm0, %v2857_v0  ;;  %v2920_v0 = vld [vmem:[%s6585_s1 + $0x1f0] sm:$0xff] }
  0x41   : > { %4428 = vmatpush3.bf16.msra.mxu0 %v4425_v58  ;;  %3649 = vmatprep.mubr.msk.f32.mxu0 %vm325_vm0, %v583_v2  ;;  %v866_v58 = vld [vmem:[%s5231_s24 + $0xa] sm:$0xff]  ;;  %s296_s24 = sand.u32 1, %s5095_s28  }
  0x42   : > { %4430 = vmatprep.subr.bf16.mxu0 %v4429_v1  ;;  %s297_s21 = scalar_lea.vmem [#allocation2], %s296_s24  ;;  %s2770_s10 = scalar_lea.sflag [#allocation3], %s296_s24 }
  0x43   : > { %s2782_s22 = sshll.u32 %s297_s21, 4  ;;  %s6544_s22 = int_to_ptr.vmem [resolvable:$true] %s2782_s22 }
  0x44   : > { %s5041_s12 = scalar_lea.vmem %s6544_s22, 16  ;;  %p5048_p0 = scmp.lt.s32.totalorder %s6544_s22, %s5046_s13 }
  0x45   : > { %4432 = vmatpush3.bf16.msra.mxu0 %v4429_v1  ;;  %v2921_v1 = vld [vmem:[%s6585_s1 + $0x1f8] sm:$0xff]  ;;  %p5042_p11 = scmp.ne.s32.totalorder %s6544_s22, %s5041_s12  ;;  %p5049_p1 = scmp.lt.s32.totalorder %s5047_s17, %s5041_s12 }
  0x46   : > { %4434 = vmatprep.subr.bf16.mxu0 %v4433_v6  ;;  %v4501_v2 = vpack.c.bf16 %v2921_v1, %v2920_v0  ;;  %v1161_v1 = vld [vmem:[%s6587_s3 + $0x18] sm:$0xff] }
  0x47   : > { %v4549_v4 = vpack.c.bf16 %v1161_v1, %v1160_v62  ;;  %v3038_v62 = vld [vmem:[%s6587_s3 + $0x3a8] sm:$0xff]  ;;  %v2959_v1 = vld [vmem:[%s6587_s3 + $0x130] sm:$0xff]  ;;  %p5043_p12 = pnand %p5042_p11, %p5192_p5  ;;  %p5050_p2 = por %p5049_p1, %p5048_p0 }
  0x49   : > { %4436 = vmatpush3.bf16.msra.mxu0 %v4433_v6  ;;  %v2928_v6 = vld [vmem:[%s6585_s1 + $0x210] sm:$0xff]  ;;  %p5044_p13 = pneg %p5043_p12 }
  0x4a   : > { %4438 = vmatprep.subr.bf16.mxu0 %v4437_v9 }
  0x4b   : > { %p5051_p3 = pnand %p5050_p2, %p5044_p13 }
  0x4d   : > { %4440 = vmatpush3.bf16.msra.mxu0 %v4437_v9  ;;  %v4509_v9 = vpack.c.bf16 %v2929_v7, %v2928_v6  ;;  %v1162_v6 = vld [vmem:[%s6587_s3 + $0x20] sm:$0xff]  ;;  %v1163_v7 = vld [vmem:[%s6587_s3 + $0x28] sm:$0xff] }
  0x4e   : > { %4442 = vmatprep.subr.bf16.mxu0 %v4441_v12 }
  0x50   : > { %3650 = vmatmul.mubr.msk.f32.vlgmr.msra.gmra.mrb[0].mxu0 %vm325_vm0, %v584_v15  ;;  %v2933_v15 = vld [vmem:[%s6585_s1 + $0x238] sm:$0xff] }
  0x51   : > { %4444 = vmatpush3.bf16.msra.mxu0 %v4441_v12  ;;  %3668 = vmatprep.mubr.msk.f32.mxu0 %vm325_vm0, %v2878_v17  ;;  %v2931_v12 = vld [vmem:[%s6585_s1 + $0x228] sm:$0xff]  ;;  %v2937_v17 = vld [vmem:[%s6587_s3 + $0x80] sm:$0xff] }
  0x52   : > { %4446 = vmatprep.subr.bf16.mxu0 %v4445_v16  ;;  %v4513_v13 = vpack.c.bf16 %v2931_v12, %v2930_v11  ;;  %v1164_v12 = vld [vmem:[%s6587_s3 + $0x30] sm:$0xff] }
  0x55   : > { %4448 = vmatpush3.bf16.msra.mxu0 %v4445_v16  ;;  %v4517_v16 = vpack.c.bf16 %v2933_v15, %v2932_v14  ;;  %v3023_v14 = vld [vmem:[%s6587_s3 + $0x330] sm:$0xff]  ;;  %v3024_v15 = vld [vmem:[%s6587_s3 + $0x338] sm:$0xff] }
  0x56   : > { %4450 = vmatprep.subr.bf16.mxu0 %v4449_v20 }
  0x59   : > { %4452 = vmatpush3.bf16.msra.mxu0 %v4449_v20  ;;  %v4522_v20 = vpack.c.bf16 %v2938_v18, %v2937_v17  ;;  %v4675_v17 = vpack.c.bf16 %v3024_v15, %v3023_v14  ;;  %v1166_v18 = vld [vmem:[%s6587_s3 + $0x40] sm:$0xff]  ;;  %v2964_v14 = vld [vmem:[%s6587_s3 + $0x158] sm:$0xff]  ;;  %v3043_v15 = vld [vmem:[%s6587_s3 + $0x3d0] sm:$0xff] }
  0x5a   : > { %4454 = vmatprep.subr.bf16.mxu0 %v4453_v23 }
  0x5d   : > { %4456 = vmatpush3.bf16.msra.mxu0 %v4453_v23  ;;  %v4525_v23 = vpack.c.bf16 %v2940_v22, %v2939_v21  ;;  %v3026_v21 = vld [vmem:[%s6587_s3 + $0x348] sm:$0xff] }
  0x5e   : > { %4458 = vmatprep.subr.bf16.mxu0 %v4457_v27 }
  0x60   : > { %3669 = vmatmul.mubr.msk.f32.vlgmr.msra.gmra.mrb[0].mxu0 %vm325_vm0, %v2879_v30  ;;  %v4531_v30 = vpack.c.bf16 %v2944_v29, %v2943_v28  ;;  %v3028_v28 = vld [vmem:[%s6587_s3 + $0x358] sm:$0xff] }
  0x61   : > { %4460 = vmatpush3.bf16.msra.mxu0 %v4457_v27  ;;  %3687 = vmatprep.mubr.msk.f32.mxu0 %vm325_vm0, %v2890_v32  ;;  %v4528_v27 = vpack.c.bf16 %v2942_v26, %v2941_v25  ;;  %v2946_v32 = vld [vmem:[%s6587_s3 + $0xc8] sm:$0xff]  ;;  %v1168_v25 = vld [vmem:[%s6587_s3 + $0x50] sm:$0xff]  ;;  %v1169_v26 = vld [vmem:[%s6587_s3 + $0x58] sm:$0xff] }
  0x62   : > { %4462 = vmatprep.subr.bf16.mxu0 %v4461_v31  ;;  %v4561_v29 = vpack.c.bf16 %v1169_v26, %v1168_v25  ;;  %v2967_v26 = vld [vmem:[%s6587_s3 + $0x170] sm:$0xff] }
  0x65   : > { %4464 = vmatpush3.bf16.msra.mxu0 %v4461_v31  ;;  %v2945_v31 = vld [vmem:[%s6587_s3 + $0xc0] sm:$0xff] }
  0x66   : > { %4466 = vmatprep.subr.bf16.mxu0 %v4465_v35  ;;  %v4534_v33 = vpack.c.bf16 %v2946_v32, %v2945_v31  ;;  %v1170_v31 = vld [vmem:[%s6587_s3 + $0x60] sm:$0xff]  ;;  %v1171_v32 = vld [vmem:[%s6587_s3 + $0x68] sm:$0xff] }
  0x69   : > { %4468 = vmatpush3.bf16.msra.mxu0 %v4465_v35  ;;  %v2948_v35 = vld [vmem:[%s6587_s3 + $0xd8] sm:$0xff] }
  0x6a   : > { %4470 = vmatprep.subr.bf16.mxu0 %v4469_v38  ;;  %v4537_v36 = vpack.c.bf16 %v2948_v35, %v2947_v34  ;;  %v3030_v34 = vld [vmem:[%s6587_s3 + $0x368] sm:$0xff]  ;;  %v4564_v35 = vpack.c.bf16 %v1171_v32, %v1170_v31  ;;  %v2969_v32 = vld [vmem:[%s6587_s3 + $0x180] sm:$0xff] }
  0x6d   : > { %4472 = vmatpush3.bf16.msra.mxu0 %v4469_v38  ;;  %v2950_v38 = vld [vmem:[%s6587_s3 + $0xe8] sm:$0xff] }
  0x6e   : > { %4474 = vmatprep.subr.bf16.mxu0 %v4473_v41  ;;  %v4540_v40 = vpack.c.bf16 %v2950_v38, %v2949_v37  ;;  %v1172_v37 = vld [vmem:[%s6587_s3 + $0x70] sm:$0xff]  ;;  %v1173_v38 = vld [vmem:[%s6587_s3 + $0x78] sm:$0xff] }
  0x70   : > { %3688 = vmatmul.mubr.msk.f32.vlgmr.msra.gmra.mrb[0].mxu0 %vm325_vm0, %v2891_v44  ;;  %v2952_v44 = vld [vmem:[%s6587_s3 + $0xf8] sm:$0xff] }
  0x71   : > { %4476 = vmatpush3.bf16.msra.mxu0 %v4473_v41  ;;  %3706 = vmatprep.mubr.msk.f32.mxu0 %vm325_vm0, %v865_v46  ;;  %v3014_v41 = vld [vmem:[%s6587_s3 + $0x2e8] sm:$0xff]  ;;  %v4543_v46 = vpack.c.bf16 %v2952_v44, %v2951_v43  ;;  %v2953_v43 = vld [vmem:[%s6587_s3 + $0x100] sm:$0xff] }
  0x72   : > { %4478 = vmatprep.subr.bf16.mxu0 %v4477_v45  ;;  %v4660_v42 = vpack.c.bf16 %v3014_v41, %v3013_v39  ;;  %v3031_v39 = vld [vmem:[%s6587_s3 + $0x370] sm:$0xff]  ;;  %v4567_v41 = vpack.c.bf16 %v1173_v38, %v1172_v37  ;;  %v2954_v44 = vld [vmem:[%s6587_s3 + $0x108] sm:$0xff] }
  0x73   : > { %v2971_v38 = vld [vmem:[%s6587_s3 + $0x190] sm:$0xff] }
  0x74   : > { %4661 = vmatpush3.bf16.msra.mxu1 %v4660_v42 }
  0x75   : > { %4480 = vmatpush3.bf16.msra.mxu0 %v4477_v45  ;;  %v3015_v45 = vld [vmem:[%s6587_s3 + $0x2f0] sm:$0xff]  ;;  %4662 = vmatprep.subr.bf16.mxu1 %v5105_v24 }
  0x76   : > { %4482 = vmatprep.subr.bf16.mxu0 %v4481_v49  ;;  %v4663_v48 = vpack.c.bf16 %v3016_v47, %v3015_v45  ;;  %v3033_v45 = vld [vmem:[%s6587_s3 + $0x380] sm:$0xff]  ;;  %v4570_v47 = vpack.c.bf16 %v2954_v44, %v2953_v43  ;;  %v3052_v43 = vld [vmem:[%s6587_s3 + $0x418] sm:$0xff] }
  0x78   : > { %4664 = vmatpush3.bf16.msra.mxu1 %v4663_v48 }
  0x79   : > { %4484 = vmatpush3.bf16.msra.mxu0 %v4481_v49  ;;  %v5107_v49 = vmov 0.0   ;;  %4665 = vmatprep.subr.bf16.mxu1 %v5105_v24 }
  0x7a   : > { %4486 = vmatprep.subr.bf16.mxu0 %v4485_v52  ;;  %3954 = vmatprep.mubr.msk.f32.mxu1 %vm5106_vm1, %v5107_v49 }
  0x7d   : > { %4488 = vmatpush3.bf16.msra.mxu0 %v4485_v52 }
  0x7e   : > { %4490 = vmatprep.subr.bf16.mxu0 %v4489_v55 }
  0x80   : > { %3707 = vmatmul.mubr.msk.f32.vlgmr.msra.gmra.mrb[0].mxu0 %vm325_vm0, %v866_v58  ;;  %v3018_v58 = vld [vmem:[%s6587_s3 + $0x308] sm:$0xff] }
  0x81   : > { %4492 = vmatpush3.bf16.msra.mxu0 %v4489_v55  ;;  %3725 = vmatprep.mubr.msk.f32.mxu0 %vm325_vm0, %v2912_v60  ;;  %v4546_v60 = vpack.c.bf16 %v1159_v56, %v1158_v54  ;;  %v4666_v61 = vpack.c.bf16 %v3018_v58, %v3017_v57  ;;  %v3035_v54 = vld [vmem:[%s6587_s3 + $0x390] sm:$0xff]  ;;  %v2957_v58 = vld [vmem:[%s6587_s3 + $0x120] sm:$0xff] }
  0x82   : > { %4494 = vmatprep.subr.bf16.mxu0 %v4493_v59 }
  0x85   : > { %4496 = vmatpush3.bf16.msra.mxu0 %v4493_v59 }
  0x86   : > { %4498 = vmatprep.subr.bf16.mxu0 %v4497_v63 }
  0x89   : > { %4500 = vmatpush3.bf16.msra.mxu0 %v4497_v63 }
  0x8a   : > { %4502 = vmatprep.subr.bf16.mxu0 %v4501_v2 }
  0x8d   : > { %4504 = vmatpush3.bf16.msra.mxu0 %v4501_v2  ;;  %v3019_v2 = vld [vmem:[%s6587_s3 + $0x310] sm:$0xff] }
  0x8e   : > { %4506 = vmatprep.subr.bf16.mxu0 %v4505_v5 }
  0x90   : > { %3726 = vmatmul.mubr.msk.f32.vlgmr.msra.gmra.mrb[0].mxu0 %vm325_vm0, %v2913_v8  ;;  %v3021_v8 = vld [vmem:[%s6587_s3 + $0x320] sm:$0xff] }
  0x91   : > { %4508 = vmatpush3.bf16.msra.mxu0 %v4505_v5  ;;  %3744 = vmatprep.mubr.msk.f32.mxu0 %vm325_vm0, %v2924_v10  ;;  %v4669_v5 = vpack.c.bf16 %v3020_v3, %v3019_v2  ;;  %v4552_v10 = vpack.c.bf16 %v1163_v7, %v1162_v6  ;;  %v2960_v2 = vld [vmem:[%s6587_s3 + $0x138] sm:$0xff]  ;;  %v3039_v3 = vld [vmem:[%s6587_s3 + $0x3b0] sm:$0xff]  ;;  %v2961_v7 = vld [vmem:[%s6587_s3 + $0x140] sm:$0xff] }
  0x92   : > { %4510 = vmatprep.subr.bf16.mxu0 %v4509_v9 }
  0x95   : > { %4512 = vmatpush3.bf16.msra.mxu0 %v4509_v9  ;;  %v3022_v9 = vld [vmem:[%s6587_s3 + $0x328] sm:$0xff] }
  0x96   : > { %4514 = vmatprep.subr.bf16.mxu0 %v4513_v13  ;;  %v4672_v11 = vpack.c.bf16 %v3022_v9, %v3021_v8  ;;  %v2962_v8 = vld [vmem:[%s6587_s3 + $0x148] sm:$0xff]  ;;  %v3041_v9 = vld [vmem:[%s6587_s3 + $0x3c0] sm:$0xff] }
  0x99   : > { %4516 = vmatpush3.bf16.msra.mxu0 %v4513_v13  ;;  %v1165_v13 = vld [vmem:[%s6587_s3 + $0x38] sm:$0xff] }
  0x9a   : > { %4518 = vmatprep.subr.bf16.mxu0 %v4517_v16 }
  0x9d   : > { %4520 = vmatpush3.bf16.msra.mxu0 %v4517_v16  ;;  %v4555_v16 = vpack.c.bf16 %v1165_v13, %v1164_v12  ;;  %v2963_v13 = vld [vmem:[%s6587_s3 + $0x150] sm:$0xff] }
  0x9e   : > { %4521 = vmatprep.subr.bf16.mxu0 %v5105_v24 }
  0xa0   : > { %3745 = vmatmul.mubr.msk.f32.vlgmr.msra.gmra.mrb[0].mxu0 %vm325_vm0, %v2925_v19  ;;  %v1167_v19 = vld [vmem:[%s6587_s3 + $0x48] sm:$0xff] }
  0xa1   : > { %4523 = vmatpush3.bf16.msra.mxu0 %v4522_v20  ;;  %3779 = vmatprep.mubr.msk.f32.mxu0 %vm5106_vm1, %v5107_v49  ;;  %v3025_v20 = vld [vmem:[%s6587_s3 + $0x340] sm:$0xff]  ;;  %v4558_v22 = vpack.c.bf16 %v1167_v19, %v1166_v18 }
  0xa2   : > { %4524 = vmatprep.subr.bf16.mxu0 %v5105_v24  ;;  %v2965_v19 = vld [vmem:[%s6587_s3 + $0x160] sm:$0xff] }
  0xa5   : > { %4526 = vmatpush3.bf16.msra.mxu0 %v4525_v23  ;;  %v4678_v23 = vpack.c.bf16 %v3026_v21, %v3025_v20  ;;  %v2966_v20 = vld [vmem:[%s6587_s3 + $0x168] sm:$0xff]  ;;  %v3045_v21 = vld [vmem:[%s6587_s3 + $0x3e0] sm:$0xff] }
  0xa6   : > { %4527 = vmatprep.subr.bf16.mxu0 %v5105_v24 }
  0xa9   : > { %4529 = vmatpush3.bf16.msra.mxu0 %v4528_v27  ;;  %v3027_v27 = vld [vmem:[%s6587_s3 + $0x350] sm:$0xff] }
  0xaa   : > { %4530 = vmatprep.subr.bf16.mxu0 %v5105_v24 }
  0xad   : > { %4532 = vmatpush3.bf16.msra.mxu0 %v4531_v30  ;;  %v4681_v30 = vpack.c.bf16 %v3028_v28, %v3027_v27  ;;  %v2968_v27 = vld [vmem:[%s6587_s3 + $0x178] sm:$0xff]  ;;  %v3047_v28 = vld [vmem:[%s6587_s3 + $0x3f0] sm:$0xff] }
  0xae   : > { %4533 = vmatprep.subr.bf16.mxu0 %v5105_v24 }
  0xb1   : > { %4535 = vmatpush3.bf16.msra.mxu0 %v4534_v33  ;;  %v3029_v33 = vld [vmem:[%s6587_s3 + $0x360] sm:$0xff] }
  0xb2   : > { %4536 = vmatprep.subr.bf16.mxu0 %v5105_v24 }
  0xb5   : > { %4538 = vmatpush3.bf16.msra.mxu0 %v4537_v36  ;;  %v4684_v36 = vpack.c.bf16 %v3030_v34, %v3029_v33  ;;  %v2970_v33 = vld [vmem:[%s6587_s3 + $0x188] sm:$0xff]  ;;  %v3049_v34 = vld [vmem:[%s6587_s3 + $0x400] sm:$0xff] }
  0xb6   : > { %4539 = vmatprep.subr.bf16.mxu0 %v5105_v24 }
  0xb9   : > { %4541 = vmatpush3.bf16.msra.mxu0 %v4540_v40  ;;  %v3032_v40 = vld [vmem:[%s6587_s3 + $0x378] sm:$0xff] }
  0xba   : > { %4542 = vmatprep.subr.bf16.mxu0 %v5105_v24  ;;  %v4687_v42 = vpack.c.bf16 %v3032_v40, %v3031_v39 }
  0xbd   : > { %4544 = vmatpush3.bf16.msra.mxu0 %v4543_v46  ;;  %v3034_v46 = vld [vmem:[%s6587_s3 + $0x388] sm:$0xff] }
  0xbe   : > { %4545 = vmatprep.subr.bf16.mxu0 %v5105_v24  ;;  %v4690_v48 = vpack.c.bf16 %v3034_v46, %v3033_v45  ;;  %v2973_v46 = vld [vmem:[%s6587_s3 + $0x1a0] sm:$0xff] }
 0x173   : > { %v3746_v51 = vpop.f32.mrb[0].mxu0 }
 0x174   : > { %v5582_v52 = vadd.f32 %v3746_v51, %v2936_v50  ;;  %v1136_v53 = vpop.f32.mrb[1].mxu0 }
 0x175   : > { %v1154_v55 = vadd.f32 %v2936_v50, %v1136_v53  ;;  %v2955_v50 = vld [vmem:[%s6587_s3 + $0x110] sm:$0xff]  ;;  %v2956_v53 = vld [vmem:[%s6587_s3 + $0x118] sm:$0xff] }
 0x176   : > { %v4573_v56 = vpack.c.bf16 %v2956_v53, %v2955_v50  ;;  %v3054_v50 = vld [vmem:[%s6587_s3 + $0x428] sm:$0xff] }
 0x177   : > { %v5596_v59 = vmax.f32 %v1154_v55, 0.0  ;;  %v3036_v55 = vld [vmem:[%s6587_s3 + $0x398] sm:$0xff] }
 0x178   : > { %v4693_v57 = vpack.c.bf16 %v3036_v55, %v3035_v54  ;;  %v2975_v54 = vld [vmem:[%s6587_s3 + $0x1b0] sm:$0xff]  ;;  %v2976_v55 = vld [vmem:[%s6587_s3 + $0x1b8] sm:$0xff] }
 0x179   : > { %v1192_v63 = vrot.slane %v5596_v59, 1  ;;  %v1621_v0 = vrot.slane %v5596_v59, 5  ;;  %v1711_v51 = vrot.slane %v5596_v59, 6  ;;  %v1351_v39 = vrot.slane %v5596_v59, 2 }
 0x17a   : > { %v1801_v40 = vrot.slane %v5596_v59, 7 }
 0x17b   : > { %3780 = vmatmul.mubr.f32.vlgmr.msra.gmra.mrb[2].mxu0 %v1192_v63  ;;  %3955 = vmatmul.mubr.f32.vlgmr.msra.gmra.mrb[0].mxu1 %v1621_v0 }
 0x17c   : > { %4547 = vmatpush3.bf16.msra.mxu0 %v4546_v60  ;;  %4667 = vmatpush3.bf16.msra.mxu1 %v4666_v61  ;;  %v2958_v60 = vld [vmem:[%s6587_s3 + $0x128] sm:$0xff]  ;;  %v3037_v61 = vld [vmem:[%s6587_s3 + $0x3a0] sm:$0xff] }
 0x17d   : > { %4548 = vmatprep.subr.bf16.mxu0 %v5105_v24  ;;  %4668 = vmatprep.subr.bf16.mxu1 %v5105_v24  ;;  %v4576_v63 = vpack.c.bf16 %v2958_v60, %v2957_v58  ;;  %v4696_v0 = vpack.c.bf16 %v3038_v62, %v3037_v61  ;;  %v4603_v58 = vpack.c.bf16 %v2976_v55, %v2975_v54  ;;  %v2977_v61 = vld [vmem:[%s6587_s3 + $0x1c0] sm:$0xff]  ;;  %v2978_v62 = vld [vmem:[%s6587_s3 + $0x1c8] sm:$0xff]  ;;  %v2995_v55 = vld [vmem:[%s6587_s3 + $0x250] sm:$0xff] }
 0x17e   : > { %3814 = vmatprep.mubr.msk.f32.mxu0 %vm5106_vm1, %v5107_v49  ;;  %3989 = vmatprep.mubr.msk.f32.mxu1 %vm5106_vm1, %v5107_v49 }
 0x180   : > { %4550 = vmatpush3.bf16.msra.mxu0 %v4549_v4  ;;  %4670 = vmatpush3.bf16.msra.mxu1 %v4669_v5  ;;  %v3040_v4 = vld [vmem:[%s6587_s3 + $0x3b8] sm:$0xff]  ;;  %v4579_v5 = vpack.c.bf16 %v2960_v2, %v2959_v1  ;;  %v4606_v1 = vpack.c.bf16 %v2978_v62, %v2977_v61  ;;  %v2997_v62 = vld [vmem:[%s6587_s3 + $0x260] sm:$0xff] }
 0x181   : > { %4551 = vmatprep.subr.bf16.mxu0 %v5105_v24  ;;  %4671 = vmatprep.subr.bf16.mxu1 %v5105_v24  ;;  %v4699_v6 = vpack.c.bf16 %v3040_v4, %v3039_v3  ;;  %v2979_v3 = vld [vmem:[%s6587_s3 + $0x1d0] sm:$0xff]  ;;  %v2980_v4 = vld [vmem:[%s6587_s3 + $0x1d8] sm:$0xff] }
 0x184   : > { %4553 = vmatpush3.bf16.msra.mxu0 %v4552_v10  ;;  %4673 = vmatpush3.bf16.msra.mxu1 %v4672_v11  ;;  %v3042_v10 = vld [vmem:[%s6587_s3 + $0x3c8] sm:$0xff]  ;;  %v4582_v11 = vpack.c.bf16 %v2962_v8, %v2961_v7  ;;  %v4609_v7 = vpack.c.bf16 %v2980_v4, %v2979_v3  ;;  %v2999_v4 = vld [vmem:[%s6587_s3 + $0x270] sm:$0xff] }
 0x185   : > { %4554 = vmatprep.subr.bf16.mxu0 %v5105_v24  ;;  %4674 = vmatprep.subr.bf16.mxu1 %v5105_v24  ;;  %v4702_v12 = vpack.c.bf16 %v3042_v10, %v3041_v9  ;;  %v2981_v9 = vld [vmem:[%s6587_s3 + $0x1e0] sm:$0xff]  ;;  %v2982_v10 = vld [vmem:[%s6587_s3 + $0x1e8] sm:$0xff] }
 0x188   : > { %4556 = vmatpush3.bf16.msra.mxu0 %v4555_v16  ;;  %4676 = vmatpush3.bf16.msra.mxu1 %v4675_v17  ;;  %v3044_v16 = vld [vmem:[%s6587_s3 + $0x3d8] sm:$0xff]  ;;  %v4585_v17 = vpack.c.bf16 %v2964_v14, %v2963_v13  ;;  %v4612_v13 = vpack.c.bf16 %v2982_v10, %v2981_v9  ;;  %v3081_v10 = vld [vmem:[%s6587_s3 + $0x500] sm:$0xff] }
 0x189   : > { %4557 = vmatprep.subr.bf16.mxu0 %v5105_v24  ;;  %4677 = vmatprep.subr.bf16.mxu1 %v5105_v24  ;;  %v4705_v18 = vpack.c.bf16 %v3044_v16, %v3043_v15  ;;  %v2983_v15 = vld [vmem:[%s6587_s3 + $0x1f0] sm:$0xff]  ;;  %v2984_v16 = vld [vmem:[%s6587_s3 + $0x1f8] sm:$0xff] }
 0x18c   : > { %4559 = vmatpush3.bf16.msra.mxu0 %v4558_v22  ;;  %4679 = vmatpush3.bf16.msra.mxu1 %v4678_v23  ;;  %v3046_v22 = vld [vmem:[%s6587_s3 + $0x3e8] sm:$0xff]  ;;  %v4588_v23 = vpack.c.bf16 %v2966_v20, %v2965_v19  ;;  %v4615_v19 = vpack.c.bf16 %v2984_v16, %v2983_v15  ;;  %v3083_v15 = vld [vmem:[%s6587_s3 + $0x510] sm:$0xff]  ;;  %v3084_v16 = vld [vmem:[%s6587_s3 + $0x518] sm:$0xff] }
 0x18d   : > { %4560 = vmatprep.subr.bf16.mxu0 %v5105_v24  ;;  %4680 = vmatprep.subr.bf16.mxu1 %v5105_v24  ;;  %v4708_v25 = vpack.c.bf16 %v3046_v22, %v3045_v21  ;;  %v2985_v21 = vld [vmem:[%s6587_s3 + $0x200] sm:$0xff]  ;;  %v2986_v22 = vld [vmem:[%s6587_s3 + $0x208] sm:$0xff] }
 0x190   : > { %4562 = vmatpush3.bf16.msra.mxu0 %v4561_v29  ;;  %4682 = vmatpush3.bf16.msra.mxu1 %v4681_v30  ;;  %v3048_v29 = vld [vmem:[%s6587_s3 + $0x3f8] sm:$0xff]  ;;  %v4591_v30 = vpack.c.bf16 %v2968_v27, %v2967_v26  ;;  %v4618_v26 = vpack.c.bf16 %v2986_v22, %v2985_v21 }
 0x191   : > { %4563 = vmatprep.subr.bf16.mxu0 %v5105_v24  ;;  %4683 = vmatprep.subr.bf16.mxu1 %v5105_v24  ;;  %v4711_v31 = vpack.c.bf16 %v3048_v29, %v3047_v28  ;;  %v2987_v28 = vld [vmem:[%s6587_s3 + $0x210] sm:$0xff]  ;;  %v5954_v29 = vmax.f32 %v5582_v52, 0.0  ;;  %v3088_v21 = vld [vmem:[%s6587_s3 + $0x538] sm:$0xff] }
 0x194   : > { %4565 = vmatpush3.bf16.msra.mxu0 %v4564_v35  ;;  %4685 = vmatpush3.bf16.msra.mxu1 %v4684_v36  ;;  %v3050_v35 = vld [vmem:[%s6587_s3 + $0x408] sm:$0xff]  ;;  %v4594_v36 = vpack.c.bf16 %v2970_v33, %v2969_v32  ;;  %v3067_v32 = vld [vmem:[%s6587_s3 + $0x490] sm:$0xff]  ;;  %v3068_v33 = vld [vmem:[%s6587_s3 + $0x498] sm:$0xff] }
 0x195   : > { %4566 = vmatprep.subr.bf16.mxu0 %v5105_v24  ;;  %4686 = vmatprep.subr.bf16.mxu1 %v5105_v24  ;;  %v4714_v37 = vpack.c.bf16 %v3050_v35, %v3049_v34  ;;  %v4741_v34 = vpack.c.bf16 %v3068_v33, %v3067_v32  ;;  %v2989_v35 = vld [vmem:[%s6587_s3 + $0x220] sm:$0xff]  ;;  %v3094_v32 = vld [vmem:[%s6587_s3 + $0x568] sm:$0xff] }
 0x198   : > { %4568 = vmatpush3.bf16.msra.mxu0 %v4567_v41  ;;  %4688 = vmatpush3.bf16.msra.mxu1 %v4687_v42  ;;  %v2972_v41 = vld [vmem:[%s6587_s3 + $0x198] sm:$0xff]  ;;  %v3051_v42 = vld [vmem:[%s6587_s3 + $0x410] sm:$0xff] }
 0x199   : > { %4569 = vmatprep.subr.bf16.mxu0 %v5105_v24  ;;  %4689 = vmatprep.subr.bf16.mxu1 %v5105_v24  ;;  %v4597_v44 = vpack.c.bf16 %v2972_v41, %v2971_v38  ;;  %v4717_v45 = vpack.c.bf16 %v3052_v43, %v3051_v42  ;;  %v3070_v38 = vld [vmem:[%s6587_s3 + $0x4a8] sm:$0xff]  ;;  %v2991_v41 = vld [vmem:[%s6587_s3 + $0x230] sm:$0xff]  ;;  %v2992_v42 = vld [vmem:[%s6587_s3 + $0x238] sm:$0xff] }
 0x19a   : > { %v3071_v43 = vld [vmem:[%s6587_s3 + $0x4b0] sm:$0xff] }
 0x19b   : > { %3815 = vmatmul.mubr.f32.vlgmr.msra.gmra.mrb[2].mxu0 %v5596_v59  ;;  %3990 = vmatmul.mubr.f32.vlgmr.msra.gmra.mrb[0].mxu1 %v1711_v51 }
 0x19c   : > { %4571 = vmatpush3.bf16.msra.mxu0 %v4570_v47  ;;  %4691 = vmatpush3.bf16.msra.mxu1 %v4690_v48  ;;  %v2974_v47 = vld [vmem:[%s6587_s3 + $0x1a8] sm:$0xff]  ;;  %v3053_v48 = vld [vmem:[%s6587_s3 + $0x420] sm:$0xff] }
 0x19d   : > { %4572 = vmatprep.subr.bf16.mxu0 %v5105_v24  ;;  %4692 = vmatprep.subr.bf16.mxu1 %v5105_v24  ;;  %v4600_v51 = vpack.c.bf16 %v2974_v47, %v2973_v46  ;;  %v4720_v53 = vpack.c.bf16 %v3054_v50, %v3053_v48  ;;  %v2993_v47 = vld [vmem:[%s6587_s3 + $0x240] sm:$0xff]  ;;  %v2994_v48 = vld [vmem:[%s6587_s3 + $0x248] sm:$0xff] }
 0x19e   : > { %3849 = vmatprep.mubr.msk.f32.mxu0 %vm5106_vm1, %v5107_v49  ;;  %4024 = vmatprep.mubr.msk.f32.mxu1 %vm5106_vm1, %v5107_v49  ;;  %v3073_v50 = vld [vmem:[%s6587_s3 + $0x4c0] sm:$0xff] }
 0x1a0   : > { %4574 = vmatpush3.bf16.msra.mxu0 %v4573_v56  ;;  %4694 = vmatpush3.bf16.msra.mxu1 %v4693_v57  ;;  %v3055_v56 = vld [vmem:[%s6587_s3 + $0x430] sm:$0xff]  ;;  %v3056_v57 = vld [vmem:[%s6587_s3 + $0x438] sm:$0xff] }
 0x1a1   : > { %4575 = vmatprep.subr.bf16.mxu0 %v5105_v24  ;;  %4695 = vmatprep.subr.bf16.mxu1 %v5105_v24  ;;  %v4723_v60 = vpack.c.bf16 %v3056_v57, %v3055_v56  ;;  %v2996_v56 = vld [vmem:[%s6587_s3 + $0x258] sm:$0xff]  ;;  %v3075_v57 = vld [vmem:[%s6587_s3 + $0x4d0] sm:$0xff] }
 0x1a4   : > { %4577 = vmatpush3.bf16.msra.mxu0 %v4576_v63  ;;  %4697 = vmatpush3.bf16.msra.mxu1 %v4696_v0  ;;  %v3057_v63 = vld [vmem:[%s6587_s3 + $0x440] sm:$0xff]  ;;  %v3058_v0 = vld [vmem:[%s6587_s3 + $0x448] sm:$0xff] }
 0x1a5   : > { %4578 = vmatprep.subr.bf16.mxu0 %v5105_v24  ;;  %4698 = vmatprep.subr.bf16.mxu1 %v5105_v24  ;;  %v4726_v2 = vpack.c.bf16 %v3058_v0, %v3057_v63  ;;  %v2998_v63 = vld [vmem:[%s6587_s3 + $0x268] sm:$0xff]  ;;  %v3077_v0 = vld [vmem:[%s6587_s3 + $0x4e0] sm:$0xff] }
 0x1a8   : > { %4580 = vmatpush3.bf16.msra.mxu0 %v4579_v5  ;;  %4700 = vmatpush3.bf16.msra.mxu1 %v4699_v6  ;;  %v3059_v5 = vld [vmem:[%s6587_s3 + $0x450] sm:$0xff]  ;;  %v3060_v6 = vld [vmem:[%s6587_s3 + $0x458] sm:$0xff] }
 0x1a9   : > { %4581 = vmatprep.subr.bf16.mxu0 %v5105_v24  ;;  %4701 = vmatprep.subr.bf16.mxu1 %v5105_v24  ;;  %v4729_v8 = vpack.c.bf16 %v3060_v6, %v3059_v5  ;;  %v3000_v5 = vld [vmem:[%s6587_s3 + $0x278] sm:$0xff]  ;;  %v3079_v6 = vld [vmem:[%s6587_s3 + $0x4f0] sm:$0xff] }
 0x1ac   : > { %4583 = vmatpush3.bf16.msra.mxu0 %v4582_v11  ;;  %4703 = vmatpush3.bf16.msra.mxu1 %v4702_v12  ;;  %v3061_v11 = vld [vmem:[%s6587_s3 + $0x460] sm:$0xff]  ;;  %v3062_v12 = vld [vmem:[%s6587_s3 + $0x468] sm:$0xff] }
 0x1ad   : > { %4584 = vmatprep.subr.bf16.mxu0 %v5105_v24  ;;  %4704 = vmatprep.subr.bf16.mxu1 %v5105_v24  ;;  %v4732_v14 = vpack.c.bf16 %v3062_v12, %v3061_v11  ;;  %v3082_v11 = vld [vmem:[%s6587_s3 + $0x508] sm:$0xff] }
 0x1ae   : > { %v4762_v12 = vpack.c.bf16 %v3082_v11, %v3081_v10  ;;  %v3119_v10 = vld [vmem:[%s6587_s3 + $0x630] sm:$0xff]  ;;  %v3120_v11 = vld [vmem:[%s6587_s3 + $0x638] sm:$0xff] }
 0x1b0   : > { %4586 = vmatpush3.bf16.msra.mxu0 %v4585_v17  ;;  %4706 = vmatpush3.bf16.msra.mxu1 %v4705_v18  ;;  %v3063_v17 = vld [vmem:[%s6587_s3 + $0x470] sm:$0xff]  ;;  %v3064_v18 = vld [vmem:[%s6587_s3 + $0x478] sm:$0xff] }
 0x1b1   : > { %4587 = vmatprep.subr.bf16.mxu0 %v5105_v24  ;;  %4707 = vmatprep.subr.bf16.mxu1 %v5105_v24  ;;  %v4735_v20 = vpack.c.bf16 %v3064_v18, %v3063_v17  ;;  %v4765_v17 = vpack.c.bf16 %v3084_v16, %v3083_v15  ;;  %v3086_v18 = vld [vmem:[%s6587_s3 + $0x528] sm:$0xff]  ;;  %v3123_v16 = vld [vmem:[%s6587_s3 + $0x650] sm:$0xff] }
 0x1b4   : > { %4589 = vmatpush3.bf16.msra.mxu0 %v4588_v23  ;;  %4709 = vmatpush3.bf16.msra.mxu1 %v4708_v25  ;;  %v3065_v23 = vld [vmem:[%s6587_s3 + $0x480] sm:$0xff]  ;;  %v3066_v25 = vld [vmem:[%s6587_s3 + $0x488] sm:$0xff] }
 0x1b5   : > { %4590 = vmatprep.subr.bf16.mxu0 %v5105_v24  ;;  %4710 = vmatprep.subr.bf16.mxu1 %v5105_v24  ;;  %v4738_v27 = vpack.c.bf16 %v3066_v25, %v3065_v23  ;;  %v3089_v23 = vld [vmem:[%s6587_s3 + $0x540] sm:$0xff]  ;;  %v3090_v25 = vld [vmem:[%s6587_s3 + $0x548] sm:$0xff] }
 0x1b8   : > { %4592 = vmatpush3.bf16.msra.mxu0 %v4591_v30  ;;  %4712 = vmatpush3.bf16.msra.mxu1 %v4711_v31  ;;  %v1441_v30 = vrot.slane %v5596_v59, 3  ;;  %v2988_v31 = vld [vmem:[%s6587_s3 + $0x218] sm:$0xff] }
 0x1b9   : > { %4593 = vmatprep.subr.bf16.mxu0 %v5105_v24  ;;  %4713 = vmatprep.subr.bf16.mxu1 %v5105_v24  ;;  %v4621_v52 = vpack.c.bf16 %v2988_v31, %v2987_v28  ;;  %v3092_v28 = vld [vmem:[%s6587_s3 + $0x558] sm:$0xff]  ;;  %v3093_v31 = vld [vmem:[%s6587_s3 + $0x560] sm:$0xff] }
 0x1ba   : > { %v4780_v33 = vpack.c.bf16 %v3094_v32, %v3093_v31  ;;  %v2597_v31 = vld [vmem:[%s6588_s4 + $0x20] sm:$0xff]  ;;  %v2598_v32 = vld [vmem:[%s6588_s4 + $0x28] sm:$0xff] }
 0x1bb   : > { %3850 = vmatmul.mubr.f32.vlgmr.msra.gmra.mrb[2].mxu0 %v1351_v39  ;;  %4025 = vmatmul.mubr.f32.vlgmr.msra.gmra.mrb[0].mxu1 %v1801_v40 }
 0x1bc   : > { %4595 = vmatpush3.bf16.msra.mxu0 %v4594_v36  ;;  %4715 = vmatpush3.bf16.msra.mxu1 %v4714_v37  ;;  %v2990_v36 = vld [vmem:[%s6587_s3 + $0x228] sm:$0xff]  ;;  %v3069_v37 = vld [vmem:[%s6587_s3 + $0x4a0] sm:$0xff] }
 0x1bd   : > { %4596 = vmatprep.subr.bf16.mxu0 %v5105_v24  ;;  %4716 = vmatprep.subr.bf16.mxu1 %v5105_v24  ;;  %v4624_v39 = vpack.c.bf16 %v2990_v36, %v2989_v35  ;;  %v4744_v40 = vpack.c.bf16 %v3070_v38, %v3069_v37  ;;  %v3097_v36 = vld [vmem:[%s6587_s3 + $0x580] sm:$0xff]  ;;  %v3098_v37 = vld [vmem:[%s6587_s3 + $0x588] sm:$0xff] }
 0x1be   : > { %3884 = vmatprep.mubr.msk.f32.mxu0 %vm5106_vm1, %v5107_v49  ;;  %4059 = vmatprep.mubr.msk.f32.mxu1 %vm5106_vm1, %v5107_v49  ;;  %v4786_v38 = vpack.c.bf16 %v3098_v37, %v3097_v36  ;;  %v2599_v36 = vld [vmem:[%s6588_s4 + $0x30] sm:$0xff]  ;;  %v2600_v37 = vld [vmem:[%s6588_s4 + $0x38] sm:$0xff] }
 0x1c0   : > { %4598 = vmatpush3.bf16.msra.mxu0 %v4597_v44  ;;  %4718 = vmatpush3.bf16.msra.mxu1 %v4717_v45  ;;  %v3072_v44 = vld [vmem:[%s6587_s3 + $0x4b8] sm:$0xff]  ;;  %v4627_v45 = vpack.c.bf16 %v2992_v42, %v2991_v41 }
 0x1c1   : > { %4599 = vmatprep.subr.bf16.mxu0 %v5105_v24  ;;  %4719 = vmatprep.subr.bf16.mxu1 %v5105_v24  ;;  %v4747_v46 = vpack.c.bf16 %v3072_v44, %v3071_v43  ;;  %v3100_v41 = vld [vmem:[%s6587_s3 + $0x598] sm:$0xff]  ;;  %v3101_v43 = vld [vmem:[%s6587_s3 + $0x5a0] sm:$0xff]  ;;  %v3102_v44 = vld [vmem:[%s6587_s3 + $0x5a8] sm:$0xff] }
 0x1c4   : > { %4601 = vmatpush3.bf16.msra.mxu0 %v4600_v51  ;;  %4721 = vmatpush3.bf16.msra.mxu1 %v4720_v53  ;;  %v3074_v51 = vld [vmem:[%s6587_s3 + $0x4c8] sm:$0xff]  ;;  %v4630_v53 = vpack.c.bf16 %v2994_v48, %v2993_v47  ;;  %v3104_v47 = vld [vmem:[%s6587_s3 + $0x5b8] sm:$0xff] }
 0x1c5   : > { %4602 = vmatprep.subr.bf16.mxu0 %v5105_v24  ;;  %4722 = vmatprep.subr.bf16.mxu1 %v5105_v24  ;;  %v4750_v54 = vpack.c.bf16 %v3074_v51, %v3073_v50  ;;  %v3105_v50 = vld [vmem:[%s6587_s3 + $0x5c0] sm:$0xff]  ;;  %v3106_v51 = vld [vmem:[%s6587_s3 + $0x5c8] sm:$0xff] }
 0x1c8   : > { %4604 = vmatpush3.bf16.msra.mxu0 %v4603_v58  ;;  %4724 = vmatpush3.bf16.msra.mxu1 %v4723_v60  ;;  %v3076_v58 = vld [vmem:[%s6587_s3 + $0x4d8] sm:$0xff]  ;;  %v4633_v60 = vpack.c.bf16 %v2996_v56, %v2995_v55 }
 0x1c9   : > { %4605 = vmatprep.subr.bf16.mxu0 %v5105_v24  ;;  %4725 = vmatprep.subr.bf16.mxu1 %v5105_v24  ;;  %v4753_v61 = vpack.c.bf16 %v3076_v58, %v3075_v57  ;;  %v3108_v55 = vld [vmem:[%s6587_s3 + $0x5d8] sm:$0xff]  ;;  %v3109_v57 = vld [vmem:[%s6587_s3 + $0x5e0] sm:$0xff]  ;;  %v3110_v58 = vld [vmem:[%s6587_s3 + $0x5e8] sm:$0xff] }
 0x1cc   : > { %4607 = vmatpush3.bf16.msra.mxu0 %v4606_v1  ;;  %4727 = vmatpush3.bf16.msra.mxu1 %v4726_v2  ;;  %v3078_v1 = vld [vmem:[%s6587_s3 + $0x4e8] sm:$0xff]  ;;  %v4636_v2 = vpack.c.bf16 %v2998_v63, %v2997_v62  ;;  %v3112_v62 = vld [vmem:[%s6587_s3 + $0x5f8] sm:$0xff] }
 0x1cd   : > { %4608 = vmatprep.subr.bf16.mxu0 %v5105_v24  ;;  %4728 = vmatprep.subr.bf16.mxu1 %v5105_v24  ;;  %v4756_v3 = vpack.c.bf16 %v3078_v1, %v3077_v0  ;;  %v3113_v0 = vld [vmem:[%s6587_s3 + $0x600] sm:$0xff]  ;;  %v3114_v1 = vld [vmem:[%s6587_s3 + $0x608] sm:$0xff] }
 0x1d0   : > { %4610 = vmatpush3.bf16.msra.mxu0 %v4609_v7  ;;  %4730 = vmatpush3.bf16.msra.mxu1 %v4729_v8  ;;  %v3080_v7 = vld [vmem:[%s6587_s3 + $0x4f8] sm:$0xff]  ;;  %v4639_v8 = vpack.c.bf16 %v3000_v5, %v2999_v4  ;;  %v3115_v4 = vld [vmem:[%s6587_s3 + $0x610] sm:$0xff] }
 0x1d1   : > { %4611 = vmatprep.subr.bf16.mxu0 %v5105_v24  ;;  %4731 = vmatprep.subr.bf16.mxu1 %v5105_v24  ;;  %v4759_v9 = vpack.c.bf16 %v3080_v7, %v3079_v6  ;;  %v3116_v5 = vld [vmem:[%s6587_s3 + $0x618] sm:$0xff]  ;;  %v3117_v7 = vld [vmem:[%s6587_s3 + $0x620] sm:$0xff] }
 0x1d2   : > { %v4813_v6 = vpack.c.bf16 %v3116_v5, %v3115_v4  ;;  %v3141_v4 = vld [vmem:[%s6587_s3 + $0x6e0] sm:$0xff]  ;;  %v3142_v5 = vld [vmem:[%s6587_s3 + $0x6e8] sm:$0xff] }
 0x1d4   : > { %4613 = vmatpush3.bf16.msra.mxu0 %v4612_v13  ;;  %4733 = vmatpush3.bf16.msra.mxu1 %v4732_v14  ;;  %v1531_v13 = vrot.slane %v5596_v59, 4  ;;  %v1980_v14 = vrot.slane %v5954_v29, 1  ;;  %v3085_v59 = vld [vmem:[%s6587_s3 + $0x520] sm:$0xff] }
 0x1d5   : > { %4614 = vmatprep.subr.bf16.mxu0 %v5105_v24  ;;  %4734 = vmatprep.subr.bf16.mxu1 %v5105_v24 }
 0x1d8   : > { %4616 = vmatpush3.bf16.msra.mxu0 %v4615_v19  ;;  %4736 = vmatpush3.bf16.msra.mxu1 %v4735_v20  ;;  %v4768_v19 = vpack.c.bf16 %v3086_v18, %v3085_v59  ;;  %v3087_v20 = vld [vmem:[%s6587_s3 + $0x530] sm:$0xff]  ;;  %v3125_v18 = vld [vmem:[%s6587_s3 + $0x660] sm:$0xff] }
 0x1d9   : > { %4617 = vmatprep.subr.bf16.mxu0 %v5105_v24  ;;  %4737 = vmatprep.subr.bf16.mxu1 %v5105_v24  ;;  %v4771_v22 = vpack.c.bf16 %v3088_v21, %v3087_v20  ;;  %v2593_v20 = vld [vmem:[%s6588_s4] sm:$0xff]  ;;  %v2594_v21 = vld [vmem:[%s6588_s4 + $0x8] sm:$0xff] }
 0x1db   : > { %3885 = vmatmul.mubr.f32.vlgmr.msra.gmra.mrb[2].mxu0 %v1441_v30  ;;  %4060 = vmatmul.mubr.f32.vlgmr.msra.gmra.mrb[0].mxu1 %v5954_v29 }
 0x1dc   : > { %4619 = vmatpush3.bf16.msra.mxu0 %v4618_v26  ;;  %4739 = vmatpush3.bf16.msra.mxu1 %v4738_v27  ;;  %v4774_v26 = vpack.c.bf16 %v3090_v25, %v3089_v23  ;;  %v3091_v27 = vld [vmem:[%s6587_s3 + $0x550] sm:$0xff]  ;;  %v4906_v25 = vpack.c.bf16 %v2594_v21, %v2593_v20  ;;  %v3152_v20 = vld [vmem:[%s6587_s3 + $0x738] sm:$0xff] }
 0x1dd   : > { %4620 = vmatprep.subr.bf16.mxu0 %v5105_v24  ;;  %4740 = vmatprep.subr.bf16.mxu1 %v5105_v24  ;;  %v4777_v30 = vpack.c.bf16 %v3092_v28, %v3091_v27  ;;  %v3127_v27 = vld [vmem:[%s6587_s3 + $0x670] sm:$0xff]  ;;  %v3128_v28 = vld [vmem:[%s6587_s3 + $0x678] sm:$0xff] }
 0x1de   : > { %3919 = vmatprep.mubr.msk.f32.mxu0 %vm5106_vm1, %v5107_v49  ;;  %4094 = vmatprep.mubr.msk.f32.mxu1 %vm5106_vm1, %v5107_v49 }
 0x1e0   : > { %4622 = vmatpush3.bf16.msra.mxu0 %v4621_v52  ;;  %4742 = vmatpush3.bf16.msra.mxu1 %v4741_v34  ;;  %v3095_v52 = vld [vmem:[%s6587_s3 + $0x570] sm:$0xff]  ;;  %v3096_v34 = vld [vmem:[%s6587_s3 + $0x578] sm:$0xff] }
 0x1e1   : > { %4623 = vmatprep.subr.bf16.mxu0 %v5105_v24  ;;  %4743 = vmatprep.subr.bf16.mxu1 %v5105_v24  ;;  %v4783_v35 = vpack.c.bf16 %v3096_v34, %v3095_v52  ;;  %v3129_v52 = vld [vmem:[%s6587_s3 + $0x680] sm:$0xff]  ;;  %v3130_v34 = vld [vmem:[%s6587_s3 + $0x688] sm:$0xff] }
 0x1e4   : > { %4625 = vmatpush3.bf16.msra.mxu0 %v4624_v39  ;;  %4745 = vmatpush3.bf16.msra.mxu1 %v4744_v40  ;;  %v2070_v39 = vrot.slane %v5954_v29, 2  ;;  %v3099_v40 = vld [vmem:[%s6587_s3 + $0x590] sm:$0xff] }
 0x1e5   : > { %4626 = vmatprep.subr.bf16.mxu0 %v5105_v24  ;;  %4746 = vmatprep.subr.bf16.mxu1 %v5105_v24  ;;  %v4789_v42 = vpack.c.bf16 %v3100_v41, %v3099_v40  ;;  %v3131_v40 = vld [vmem:[%s6587_s3 + $0x690] sm:$0xff]  ;;  %v3132_v41 = vld [vmem:[%s6587_s3 + $0x698] sm:$0xff] }
 0x1e8   : > { %4628 = vmatpush3.bf16.msra.mxu0 %v4627_v45  ;;  %4748 = vmatpush3.bf16.msra.mxu1 %v4747_v46  ;;  %v4792_v45 = vpack.c.bf16 %v3102_v44, %v3101_v43  ;;  %v3103_v46 = vld [vmem:[%s6587_s3 + $0x5b0] sm:$0xff]  ;;  %v2601_v43 = vld [vmem:[%s6588_s4 + $0x40] sm:$0xff]  ;;  %v2602_v44 = vld [vmem:[%s6588_s4 + $0x48] sm:$0xff] }
 0x1e9   : > { %4629 = vmatprep.subr.bf16.mxu0 %v5105_v24  ;;  %4749 = vmatprep.subr.bf16.mxu1 %v5105_v24  ;;  %v4795_v48 = vpack.c.bf16 %v3104_v47, %v3103_v46  ;;  %v3133_v46 = vld [vmem:[%s6587_s3 + $0x6a0] sm:$0xff]  ;;  %v3134_v47 = vld [vmem:[%s6587_s3 + $0x6a8] sm:$0xff] }
 0x1ec   : > { %4631 = vmatpush3.bf16.msra.mxu0 %v4630_v53  ;;  %4751 = vmatpush3.bf16.msra.mxu1 %v4750_v54  ;;  %v4798_v53 = vpack.c.bf16 %v3106_v51, %v3105_v50  ;;  %v3107_v54 = vld [vmem:[%s6587_s3 + $0x5d0] sm:$0xff]  ;;  %v2604_v51 = vld [vmem:[%s6588_s4 + $0x58] sm:$0xff] }
 0x1ed   : > { %4632 = vmatprep.subr.bf16.mxu0 %v5105_v24  ;;  %4752 = vmatprep.subr.bf16.mxu1 %v5105_v24  ;;  %v4801_v56 = vpack.c.bf16 %v3108_v55, %v3107_v54  ;;  %v2603_v50 = vld [vmem:[%s6588_s4 + $0x50] sm:$0xff]  ;;  %v3136_v55 = vld [vmem:[%s6587_s3 + $0x6b8] sm:$0xff] }
 0x1ee   : > { %v3135_v54 = vld [vmem:[%s6587_s3 + $0x6b0] sm:$0xff] }
 0x1f0   : > { %4634 = vmatpush3.bf16.msra.mxu0 %v4633_v60  ;;  %4754 = vmatpush3.bf16.msra.mxu1 %v4753_v61  ;;  %v4804_v60 = vpack.c.bf16 %v3110_v58, %v3109_v57  ;;  %v3111_v61 = vld [vmem:[%s6587_s3 + $0x5f0] sm:$0xff]  ;;  %v2605_v57 = vld [vmem:[%s6588_s4 + $0x60] sm:$0xff]  ;;  %v2606_v58 = vld [vmem:[%s6588_s4 + $0x68] sm:$0xff] }
 0x1f1   : > { %4635 = vmatprep.subr.bf16.mxu0 %v5105_v24  ;;  %4755 = vmatprep.subr.bf16.mxu1 %v5105_v24  ;;  %v4807_v63 = vpack.c.bf16 %v3112_v62, %v3111_v61  ;;  %v3137_v61 = vld [vmem:[%s6587_s3 + $0x6c0] sm:$0xff]  ;;  %v3138_v62 = vld [vmem:[%s6587_s3 + $0x6c8] sm:$0xff] }
 0x1f4   : > { %4637 = vmatpush3.bf16.msra.mxu0 %v4636_v2  ;;  %4757 = vmatpush3.bf16.msra.mxu1 %v4756_v3  ;;  %v4810_v2 = vpack.c.bf16 %v3114_v1, %v3113_v0  ;;  %v2160_v3 = vrot.slane %v5954_v29, 3  ;;  %v4846_v0 = vpack.c.bf16 %v3138_v62, %v3137_v61  ;;  %v3139_v1 = vld [vmem:[%s6587_s3 + $0x6d0] sm:$0xff]  ;;  %v3176_v61 = vld [vmem:[%s6587_s3 + $0x7f8] sm:$0xff] }
 0x1f5   : > { %4638 = vmatprep.subr.bf16.mxu0 %v5105_v24  ;;  %4758 = vmatprep.subr.bf16.mxu1 %v5105_v24 }
 0x1f8   : > { %4640 = vmatpush3.bf16.msra.mxu0 %v4639_v8  ;;  %4760 = vmatpush3.bf16.msra.mxu1 %v4759_v9  ;;  %v3118_v8 = vld [vmem:[%s6587_s3 + $0x628] sm:$0xff] }
 0x1f9   : > { %4761 = vmatprep.subr.bf16.mxu1 %v5105_v24  ;;  %4905 = vmatprep.subr.bf16.mxu0 %v5105_v24  ;;  %v4816_v9 = vpack.c.bf16 %v3118_v8, %v3117_v7  ;;  %v3143_v7 = vld [vmem:[%s6587_s3 + $0x6f0] sm:$0xff]  ;;  %v3144_v8 = vld [vmem:[%s6587_s3 + $0x6f8] sm:$0xff] }
 0x1fb   : > { %3920 = vmatmul.mubr.f32.vlgmr.msra.gmra.mrb[2].mxu0 %v1531_v13  ;;  %4095 = vmatmul.mubr.f32.vlgmr.msra.gmra.mrb[0].mxu1 %v1980_v14  ;;  %v3121_v13 = vld [vmem:[%s6587_s3 + $0x640] sm:$0xff]  ;;  %v3122_v14 = vld [vmem:[%s6587_s3 + $0x648] sm:$0xff] }
 0x1fc   : > { %4763 = vmatpush3.bf16.msra.mxu1 %v4762_v12  ;;  %4129 = vmatprep.mubr.msk.f32.mxu1 %vm5106_vm1, %v5107_v49  ;;  %v4819_v12 = vpack.c.bf16 %v3120_v11, %v3119_v10  ;;  %v4822_v15 = vpack.c.bf16 %v3122_v14, %v3121_v13  ;;  %v3145_v10 = vld [vmem:[%s6587_s3 + $0x700] sm:$0xff]  ;;  %v3146_v11 = vld [vmem:[%s6587_s3 + $0x708] sm:$0xff]  ;;  %v2340_v13 = vrot.slane %v5954_v29, 5  ;;  %v3147_v14 = vld [vmem:[%s6587_s3 + $0x710] sm:$0xff] }
 0x1fd   : > { %4764 = vmatprep.subr.bf16.mxu1 %v5105_v24  ;;  %4339 = vmatprep.mubr.msk.f32.mxu0 %vm5106_vm1, %v5107_v49 }
 0x1fe   : > { %4907 = vmatpush3.bf16.msra.mxu0 %v4906_v25 }
 0x1ff   : > { %4908 = vmatprep.subr.bf16.mxu0 %v5105_v24 }
 0x200   : > { %4766 = vmatpush3.bf16.msra.mxu1 %v4765_v17  ;;  %v3124_v17 = vld [vmem:[%s6587_s3 + $0x658] sm:$0xff] }
 0x201   : > { %4767 = vmatprep.subr.bf16.mxu1 %v5105_v24  ;;  %v4825_v59 = vpack.c.bf16 %v3124_v17, %v3123_v16  ;;  %v3149_v17 = vld [vmem:[%s6587_s3 + $0x720] sm:$0xff] }
 0x204   : > { %4769 = vmatpush3.bf16.msra.mxu1 %v4768_v19  ;;  %v3126_v19 = vld [vmem:[%s6587_s3 + $0x668] sm:$0xff] }
 0x205   : > { %4770 = vmatprep.subr.bf16.mxu1 %v5105_v24  ;;  %v4828_v23 = vpack.c.bf16 %v3126_v19, %v3125_v18  ;;  %v3151_v19 = vld [vmem:[%s6587_s3 + $0x730] sm:$0xff] }
 0x206   : > { %v4867_v21 = vpack.c.bf16 %v3152_v20, %v3151_v19  ;;  %v2691_v20 = vld [vmem:[%s6590_s6 + $0x50] sm:$0xff] }
 0x208   : > { %4772 = vmatpush3.bf16.msra.mxu1 %v4771_v22  ;;  %v2595_v22 = vld [vmem:[%s6588_s4 + $0x10] sm:$0xff] }
 0x209   : > { %4773 = vmatprep.subr.bf16.mxu1 %v5105_v24 }
 0x20c   : > { %4775 = vmatpush3.bf16.msra.mxu1 %v4774_v26  ;;  %v2596_v26 = vld [vmem:[%s6588_s4 + $0x18] sm:$0xff] }
 0x20d   : > { %4776 = vmatprep.subr.bf16.mxu1 %v5105_v24 }
 0x210   : > { %4778 = vmatpush3.bf16.msra.mxu1 %v4777_v30  ;;  %v4909_v30 = vpack.c.bf16 %v2596_v26, %v2595_v22  ;;  %v3153_v22 = vld [vmem:[%s6587_s3 + $0x740] sm:$0xff]  ;;  %v3155_v26 = vld [vmem:[%s6587_s3 + $0x750] sm:$0xff] }
 0x211   : > { %4779 = vmatprep.subr.bf16.mxu1 %v5105_v24 }
 0x212   : > { %4910 = vmatpush3.bf16.msra.mxu0 %v4909_v30  ;;  %v3157_v30 = vld [vmem:[%s6587_s3 + $0x760] sm:$0xff] }
 0x213   : > { %4911 = vmatprep.subr.bf16.mxu0 %v5105_v24 }
 0x214   : > { %4781 = vmatpush3.bf16.msra.mxu1 %v4780_v33  ;;  %v4831_v33 = vpack.c.bf16 %v3128_v28, %v3127_v27  ;;  %v3156_v27 = vld [vmem:[%s6587_s3 + $0x758] sm:$0xff] }
 0x215   : > { %4782 = vmatprep.subr.bf16.mxu1 %v5105_v24  ;;  %v4873_v28 = vpack.c.bf16 %v3156_v27, %v3155_v26  ;;  %v2695_v27 = vld [vmem:[%s6590_s6 + $0x70] sm:$0xff] }
 0x218   : > { %4784 = vmatpush3.bf16.msra.mxu1 %v4783_v35  ;;  %v4912_v35 = vpack.c.bf16 %v2598_v32, %v2597_v31  ;;  %v3158_v31 = vld [vmem:[%s6587_s3 + $0x768] sm:$0xff] }
 0x219   : > { %4785 = vmatprep.subr.bf16.mxu1 %v5105_v24  ;;  %v4876_v32 = vpack.c.bf16 %v3158_v31, %v3157_v30  ;;  %v2609_v31 = vld [vmem:[%s6589_s5] sm:$0x1] }
 0x21a   : > { %4913 = vmatpush3.bf16.msra.mxu0 %v4912_v35  ;;  %v3161_v35 = vld [vmem:[%s6587_s3 + $0x780] sm:$0xff] }
 0x21b   : > { %4130 = vmatmul.mubr.f32.vlgmr.msra.gmra.mrb[0].mxu1 %v2070_v39  ;;  %v2250_v39 = vrot.slane %v5954_v29, 4  ;;  %4914 = vmatprep.subr.bf16.mxu0 %v5105_v24 }
 0x21c   : > { %4787 = vmatpush3.bf16.msra.mxu1 %v4786_v38  ;;  %4164 = vmatprep.mubr.msk.f32.mxu1 %vm5106_vm1, %v5107_v49  ;;  %v4834_v38 = vpack.c.bf16 %v3130_v34, %v3129_v52  ;;  %v3160_v52 = vld [vmem:[%s6587_s3 + $0x778] sm:$0xff] }
 0x21d   : > { %4788 = vmatprep.subr.bf16.mxu1 %v5105_v24 }
 0x220   : > { %4790 = vmatpush3.bf16.msra.mxu1 %v4789_v42  ;;  %v4915_v42 = vpack.c.bf16 %v2600_v37, %v2599_v36  ;;  %v3162_v36 = vld [vmem:[%s6587_s3 + $0x788] sm:$0xff] }
 0x221   : > { %4791 = vmatprep.subr.bf16.mxu1 %v5105_v24  ;;  %v4882_v37 = vpack.c.bf16 %v3162_v36, %v3161_v35 }
 0x222   : > { %4916 = vmatpush3.bf16.msra.mxu0 %v4915_v42  ;;  %v3165_v42 = vld [vmem:[%s6587_s3 + $0x7a0] sm:$0xff] }
 0x223   : > { %4917 = vmatprep.subr.bf16.mxu0 %v5105_v24 }
 0x224   : > { %4793 = vmatpush3.bf16.msra.mxu1 %v4792_v45  ;;  %v4837_v45 = vpack.c.bf16 %v3132_v41, %v3131_v40  ;;  %v3164_v40 = vld [vmem:[%s6587_s3 + $0x798] sm:$0xff] }
 0x225   : > { %4794 = vmatprep.subr.bf16.mxu1 %v5105_v24 }
 0x228   : > { %4796 = vmatpush3.bf16.msra.mxu1 %v4795_v48  ;;  %v4918_v48 = vpack.c.bf16 %v2602_v44, %v2601_v43  ;;  %v3166_v43 = vld [vmem:[%s6587_s3 + $0x7a8] sm:$0xff] }
 0x229   : > { %4797 = vmatprep.subr.bf16.mxu1 %v5105_v24  ;;  %v4888_v44 = vpack.c.bf16 %v3166_v43, %v3165_v42 }
 0x22a   : > { %4919 = vmatpush3.bf16.msra.mxu0 %v4918_v48  ;;  %v3169_v48 = vld [vmem:[%s6587_s3 + $0x7c0] sm:$0xff] }
 0x22b   : > { %4920 = vmatprep.subr.bf16.mxu0 %v5105_v24 }
 0x22c   : > { %4799 = vmatpush3.bf16.msra.mxu1 %v4798_v53  ;;  %v4840_v53 = vpack.c.bf16 %v3134_v47, %v3133_v46  ;;  %v3168_v46 = vld [vmem:[%s6587_s3 + $0x7b8] sm:$0xff] }
 0x22d   : > { %4800 = vmatprep.subr.bf16.mxu1 %v5105_v24 }
 0x230   : > { %4802 = vmatpush3.bf16.msra.mxu1 %v4801_v56  ;;  %v4921_v56 = vpack.c.bf16 %v2604_v51, %v2603_v50  ;;  %v3170_v50 = vld [vmem:[%s6587_s3 + $0x7c8] sm:$0xff] }
 0x231   : > { %4803 = vmatprep.subr.bf16.mxu1 %v5105_v24  ;;  %v4894_v51 = vpack.c.bf16 %v3170_v50, %v3169_v48 }
 0x232   : > { %4922 = vmatpush3.bf16.msra.mxu0 %v4921_v56  ;;  %v3173_v56 = vld [vmem:[%s6587_s3 + $0x7e0] sm:$0xff] }
 0x233   : > { %4923 = vmatprep.subr.bf16.mxu0 %v5105_v24 }
 0x234   : > { %4805 = vmatpush3.bf16.msra.mxu1 %v4804_v60  ;;  %v4843_v60 = vpack.c.bf16 %v3136_v55, %v3135_v54  ;;  %v3172_v54 = vld [vmem:[%s6587_s3 + $0x7d8] sm:$0xff] }
 0x235   : > { %4806 = vmatprep.subr.bf16.mxu1 %v5105_v24 }
 0x238   : > { %4808 = vmatpush3.bf16.msra.mxu1 %v4807_v63  ;;  %v4924_v63 = vpack.c.bf16 %v2606_v58, %v2605_v57  ;;  %v3174_v57 = vld [vmem:[%s6587_s3 + $0x7e8] sm:$0xff] }
 0x239   : > { %4809 = vmatprep.subr.bf16.mxu1 %v5105_v24  ;;  %v4900_v58 = vpack.c.bf16 %v3174_v57, %v3173_v56 }
 0x23a   : > { %4925 = vmatpush3.bf16.msra.mxu0 %v4924_v63  ;;  %v2520_v63 = vrot.slane %v5954_v29, 7 }
 0x23b   : > { %4165 = vmatmul.mubr.f32.vlgmr.msra.gmra.mrb[0].mxu1 %v2160_v3  ;;  %4926 = vmatprep.subr.bf16.mxu0 %v5105_v24 }
 0x23c   : > { %4811 = vmatpush3.bf16.msra.mxu1 %v4810_v2  ;;  %4199 = vmatprep.mubr.msk.f32.mxu1 %vm5106_vm1, %v5107_v49  ;;  %v3140_v2 = vld [vmem:[%s6587_s3 + $0x6d8] sm:$0xff] }
 0x23d   : > { %4812 = vmatprep.subr.bf16.mxu1 %v5105_v24  ;;  %v4849_v3 = vpack.c.bf16 %v3140_v2, %v3139_v1  ;;  %v2607_v2 = vld [vmem:[%s6588_s4 + $0x70] sm:$0xff] }
 0x240   : > { %4814 = vmatpush3.bf16.msra.mxu1 %v4813_v6  ;;  %v4852_v6 = vpack.c.bf16 %v3142_v5, %v3141_v4  ;;  %v2681_v5 = vld [vmem:[%s6590_s6] sm:$0xff] }
 0x241   : > { %4815 = vmatprep.subr.bf16.mxu1 %v5105_v24 }
 0x244   : > { %4817 = vmatpush3.bf16.msra.mxu1 %v4816_v9  ;;  %v4855_v9 = vpack.c.bf16 %v3144_v8, %v3143_v7 }
 0x245   : > { %4818 = vmatprep.subr.bf16.mxu1 %v5105_v24 }
 0x248   : > { %4820 = vmatpush3.bf16.msra.mxu1 %v4819_v12  ;;  %v4858_v12 = vpack.c.bf16 %v3146_v11, %v3145_v10  ;;  %v2683_v10 = vld [vmem:[%s6590_s6 + $0x10] sm:$0xff]  ;;  %v2684_v11 = vld [vmem:[%s6590_s6 + $0x18] sm:$0xff] }
 0x249   : > { %4821 = vmatprep.subr.bf16.mxu1 %v5105_v24 }
 0x24c   : > { %4823 = vmatpush3.bf16.msra.mxu1 %v4822_v15  ;;  %v3148_v15 = vld [vmem:[%s6587_s3 + $0x718] sm:$0xff] }
 0x24d   : > { %4824 = vmatprep.subr.bf16.mxu1 %v5105_v24  ;;  %v4861_v16 = vpack.c.bf16 %v3148_v15, %v3147_v14  ;;  %v2686_v14 = vld [vmem:[%s6590_s6 + $0x28] sm:$0xff] }
 0x250   : > { %4826 = vmatpush3.bf16.msra.mxu1 %v4825_v59  ;;  %v3150_v59 = vld [vmem:[%s6587_s3 + $0x728] sm:$0xff] }
 0x251   : > { %4827 = vmatprep.subr.bf16.mxu1 %v5105_v24  ;;  %v4864_v18 = vpack.c.bf16 %v3150_v59, %v3149_v17  ;;  %v2689_v59 = vld [vmem:[%s6590_s6 + $0x40] sm:$0xff] }
 0x254   : > { %4829 = vmatpush3.bf16.msra.mxu1 %v4828_v23  ;;  %v3154_v23 = vld [vmem:[%s6587_s3 + $0x748] sm:$0xff] }
 0x255   : > { %4830 = vmatprep.subr.bf16.mxu1 %v5105_v24  ;;  %v4870_v25 = vpack.c.bf16 %v3154_v23, %v3153_v22  ;;  %v2693_v23 = vld [vmem:[%s6590_s6 + $0x60] sm:$0xff] }
 0x258   : > { %4832 = vmatpush3.bf16.msra.mxu1 %v4831_v33  ;;  %v3159_v33 = vld [vmem:[%s6587_s3 + $0x770] sm:$0xff] }
 0x259   : > { %4833 = vmatprep.subr.bf16.mxu1 %v5105_v24  ;;  %v4879_v34 = vpack.c.bf16 %v3160_v52, %v3159_v33 }
 0x25b   : > { %4200 = vmatmul.mubr.f32.vlgmr.msra.gmra.mrb[0].mxu1 %v2250_v39  ;;  %v3163_v39 = vld [vmem:[%s6587_s3 + $0x790] sm:$0xff] }
 0x25c   : > { %4835 = vmatpush3.bf16.msra.mxu1 %v4834_v38  ;;  %4234 = vmatprep.mubr.msk.f32.mxu1 %vm5106_vm1, %v5107_v49  ;;  %v2430_v38 = vrot.slane %v5954_v29, 6  ;;  %v4885_v41 = vpack.c.bf16 %v3164_v40, %v3163_v39  ;;  %v2682_v29 = vld [vmem:[%s6590_s6 + $0x8] sm:$0xff] }
 0x25d   : > { %4836 = vmatprep.subr.bf16.mxu1 %v5105_v24  ;;  %v4930_v7 = vpack.c.bf16 %v2682_v29, %v2681_v5 }
 0x260   : > { %4838 = vmatpush3.bf16.msra.mxu1 %v4837_v45  ;;  %v3167_v45 = vld [vmem:[%s6587_s3 + $0x7b0] sm:$0xff] }
 0x261   : > { %4839 = vmatprep.subr.bf16.mxu1 %v5105_v24  ;;  %v4891_v47 = vpack.c.bf16 %v3168_v46, %v3167_v45 }
 0x264   : > { %4841 = vmatpush3.bf16.msra.mxu1 %v4840_v53  ;;  %v3171_v53 = vld [vmem:[%s6587_s3 + $0x7d0] sm:$0xff] }
 0x265   : > { %4842 = vmatprep.subr.bf16.mxu1 %v5105_v24  ;;  %v4897_v55 = vpack.c.bf16 %v3172_v54, %v3171_v53 }
 0x268   : > { %4844 = vmatpush3.bf16.msra.mxu1 %v4843_v60  ;;  %v3175_v60 = vld [vmem:[%s6587_s3 + $0x7f0] sm:$0xff] }
 0x269   : > { %4845 = vmatprep.subr.bf16.mxu1 %v5105_v24  ;;  %v4903_v62 = vpack.c.bf16 %v3176_v61, %v3175_v60 }
 0x26c   : > { %4847 = vmatpush3.bf16.msra.mxu1 %v4846_v0 }
 0x26d   : > { %4848 = vmatprep.subr.bf16.mxu1 %v5105_v24 }
 0x270   : > { %4850 = vmatpush3.bf16.msra.mxu1 %v4849_v3  ;;  %v2608_v3 = vld [vmem:[%s6588_s4 + $0x78] sm:$0xff] }
 0x271   : > { %4851 = vmatprep.subr.bf16.mxu1 %v5105_v24  ;;  %v4927_v4 = vpack.c.bf16 %v2608_v3, %v2607_v2 }
 0x273   : > { %4928 = vmatpush3.bf16.msra.mxu0 %v4927_v4 }
 0x274   : > { %4853 = vmatpush3.bf16.msra.mxu1 %v4852_v6  ;;  %4929 = vmatprep.subr.bf16.mxu0 %v5105_v24 }
 0x275   : > { %4854 = vmatprep.subr.bf16.mxu1 %v5105_v24 }
 0x278   : > { %4856 = vmatpush3.bf16.msra.mxu1 %v4855_v9 }
 0x279   : > { %4857 = vmatprep.subr.bf16.mxu1 %v5105_v24 }
 0x27b   : > { %4235 = vmatmul.mubr.f32.vlgmr.msra.gmra.mrb[0].mxu1 %v2340_v13  ;;  %v2685_v13 = vld [vmem:[%s6590_s6 + $0x20] sm:$0xff] }
 0x27c   : > { %4859 = vmatpush3.bf16.msra.mxu1 %v4858_v12  ;;  %4269 = vmatprep.mubr.msk.f32.mxu1 %vm5106_vm1, %v5107_v49  ;;  %v4933_v12 = vpack.c.bf16 %v2684_v11, %v2683_v10  ;;  %v4936_v15 = vpack.c.bf16 %v2686_v14, %v2685_v13 }
 0x27d   : > { %4860 = vmatprep.subr.bf16.mxu1 %v5105_v24 }
 0x280   : > { %4862 = vmatpush3.bf16.msra.mxu1 %v4861_v16  ;;  %v2687_v16 = vld [vmem:[%s6590_s6 + $0x30] sm:$0xff] }
 0x281   : > { %4863 = vmatprep.subr.bf16.mxu1 %v5105_v24 }
 0x284   : > { %4865 = vmatpush3.bf16.msra.mxu1 %v4864_v18  ;;  %v2690_v18 = vld [vmem:[%s6590_s6 + $0x48] sm:$0xff] }
 0x285   : > { %4866 = vmatprep.subr.bf16.mxu1 %v5105_v24  ;;  %v4942_v19 = vpack.c.bf16 %v2690_v18, %v2689_v59 }
 0x288   : > { %4868 = vmatpush3.bf16.msra.mxu1 %v4867_v21  ;;  %v2692_v21 = vld [vmem:[%s6590_s6 + $0x58] sm:$0xff] }
 0x289   : > { %4869 = vmatprep.subr.bf16.mxu1 %v5105_v24  ;;  %v4945_v22 = vpack.c.bf16 %v2692_v21, %v2691_v20 }
 0x28c   : > { %4871 = vmatpush3.bf16.msra.mxu1 %v4870_v25  ;;  %v2694_v25 = vld [vmem:[%s6590_s6 + $0x68] sm:$0xff] }
 0x28d   : > { %4872 = vmatprep.subr.bf16.mxu1 %v5105_v24  ;;  %v4948_v26 = vpack.c.bf16 %v2694_v25, %v2693_v23 }
 0x290   : > { %4874 = vmatpush3.bf16.msra.mxu1 %v4873_v28  ;;  %v2696_v28 = vld [vmem:[%s6590_s6 + $0x78] sm:$0xff] }
 0x291   : > { %4875 = vmatprep.subr.bf16.mxu1 %v5105_v24  ;;  %v4951_v30 = vpack.c.bf16 %v2696_v28, %v2695_v27 }
 0x294   : > { %4877 = vmatpush3.bf16.msra.mxu1 %v4876_v32 }
 0x295   : > { %4878 = vmatprep.subr.bf16.mxu1 %v5105_v24 }
 0x298   : > { %4880 = vmatpush3.bf16.msra.mxu1 %v4879_v34 }
 0x299   : > { %4881 = vmatprep.subr.bf16.mxu1 %v5105_v24 }
 0x29b   : > { %4270 = vmatmul.mubr.f32.vlgmr.msra.gmra.mrb[0].mxu1 %v2430_v38 }
 0x29c   : > { %4883 = vmatpush3.bf16.msra.mxu1 %v4882_v37  ;;  %4304 = vmatprep.mubr.msk.f32.mxu1 %vm5106_vm1, %v5107_v49 }
 0x29d   : > { %4884 = vmatprep.subr.bf16.mxu1 %v5105_v24 }
 0x2a0   : > { %4886 = vmatpush3.bf16.msra.mxu1 %v4885_v41 }
 0x2a1   : > { %4887 = vmatprep.subr.bf16.mxu1 %v5105_v24 }
 0x2a4   : > { %4889 = vmatpush3.bf16.msra.mxu1 %v4888_v44 }
 0x2a5   : > { %4890 = vmatprep.subr.bf16.mxu1 %v5105_v24 }
 0x2a8   : > { %4892 = vmatpush3.bf16.msra.mxu1 %v4891_v47 }
 0x2a9   : > { %4893 = vmatprep.subr.bf16.mxu1 %v5105_v24 }
 0x2ac   : > { %4895 = vmatpush3.bf16.msra.mxu1 %v4894_v51 }
 0x2ad   : > { %4896 = vmatprep.subr.bf16.mxu1 %v5105_v24 }
 0x2b0   : > { %4898 = vmatpush3.bf16.msra.mxu1 %v4897_v55 }
 0x2b1   : > { %4899 = vmatprep.subr.bf16.mxu1 %v5105_v24 }
 0x2b4   : > { %4901 = vmatpush3.bf16.msra.mxu1 %v4900_v58 }
 0x2b5   : > { %4902 = vmatprep.subr.bf16.mxu1 %v5105_v24 }
 0x2b8   : > { %4904 = vmatpush3.bf16.msra.mxu1 %v4903_v62 }
 0x2bb   : > { %4305 = vmatmul.mubr.f32.vlgmr.msra.gmra.mrb[0].mxu1 %v2520_v63 }
 0x2ce   : > { %v1599_v0 = vpop.f32.mrb[2].mxu0 }
 0x2cf   : > { %v3921_v1 = vpop.f32.mrb[3].mxu0 }
 0x38e   : > { %v2588_v6 = vpop.f32.mrb[0].mxu1 }
 0x38f   : > { %v4953_v8 = vadd.f32 %v2588_v6, %v1599_v0  ;;  %v4306_v9 = vpop.f32.mrb[1].mxu1 }
 0x391   : > { %4340 = vmatmul.mubr.f32.vlgmr.msra.gmra.mrb[4].mxu0 %v4953_v8 }
 0x392   : > { %4931 = vmatpush3.bf16.msra.mxu0 %v4930_v7  ;;  %4374 = vmatprep.mubr.msk.f32.mxu0 %vm5106_vm1, %v5107_v49  ;;  %v2688_v49 = vld [vmem:[%s6590_s6 + $0x38] sm:$0xff] }
 0x393   : > { %4932 = vmatprep.subr.bf16.mxu0 %v5105_v24  ;;  %v4939_v17 = vpack.c.bf16 %v2688_v49, %v2687_v16 }
 0x396   : > { %4934 = vmatpush3.bf16.msra.mxu0 %v4933_v12 }
 0x397   : > { %4935 = vmatprep.subr.bf16.mxu0 %v5105_v24 }
 0x39a   : > { %4937 = vmatpush3.bf16.msra.mxu0 %v4936_v15 }
 0x39b   : > { %4938 = vmatprep.subr.bf16.mxu0 %v5105_v24 }
 0x39e   : > { %4940 = vmatpush3.bf16.msra.mxu0 %v4939_v17 }
 0x39f   : > { %4941 = vmatprep.subr.bf16.mxu0 %v5105_v24 }
 0x3a2   : > { %4943 = vmatpush3.bf16.msra.mxu0 %v4942_v19 }
 0x3a3   : > { %4944 = vmatprep.subr.bf16.mxu0 %v5105_v24 }
 0x3a6   : > { %4946 = vmatpush3.bf16.msra.mxu0 %v4945_v22 }
 0x3a7   : > { %4947 = vmatprep.subr.bf16.mxu0 %v5105_v24 }
 0x3aa   : > { %4949 = vmatpush3.bf16.msra.mxu0 %v4948_v26 }
 0x3ab   : > { %4950 = vmatprep.subr.bf16.mxu0 %v5105_v24  ;;  %v2697_v24 = vld [vmem:[%s6591_s7] sm:$0x1] }
 0x3ae   : > { %4952 = vmatpush3.bf16.msra.mxu0 %v4951_v30 }
 0x464   : > { %v2676_v32 = vpop.f32.mrb[4].mxu0 }
 0x465   : > { %v2677_v33 = vadd.f32 %v2676_v32, %v2609_v31  ;;  %v4341_v52 = vpop.f32.mrb[5].mxu0 }
 0x467   : > { %v2680_v34 = vmax.f32 %v2677_v33, 0.0 }
 0x469   : > { %4375 = vmatmul.mubr.f32.vlgmr.msra.gmra.mrb[6].mxu0 %v2680_v34 }
 0x53c   : > { %v2764_v35 = vpop.f32.mrb[6].mxu0 }
 0x53d   : > { %v2765_v36 = vadd.f32 %v2764_v35, %v2697_v24  ;;  %v4376_v37 = vpop.f32.mrb[7].mxu0 }
 0x53f   : > { %2768 = vst [vmem:[%s297_s21] sm:$0x1] %v2765_v36 }
 0x540   : > { %5054 = shalt.err (!%p5051_p3)
}
 0x541   : > { %s5055_s24 = scalar_lea.hbm %s6542_s26, 16  ;;  %s5059_s20 = scalar_lea.hbm %s6592_s8, 32 }
 0x542   : > { %p5056_p4 = scmp.ne.s32.totalorder %s6542_s26, %s5055_s24  ;;  %p5060_p9 = scmp.lt.u32.totalorder %s6542_s26, %s6592_s8 }
 0x543   : > { %p5061_p10 = scmp.lt.u32.totalorder %s5059_s20, %s5055_s24  ;;  %p5063_p12 = scmp.lt.u32.totalorder %s5055_s24, %s6542_s26 }
 0x544   : > { %p5057_p7 = pnand %p5056_p4, %p5192_p5 }
 0x545   : > { %p5062_p11 = por %p5061_p10, %p5060_p9 }
 0x546   : > { %p5058_p8 = pneg %p5057_p7 }
 0x547   : > { %p5064_p13 = por %p5063_p12, %p5062_p11 }
 0x549   : > { %p5065_p0 = pnand %p5064_p13, %p5058_p8 }
 0x54b   : > { %5068 = shalt.err (!%p5065_p0)
}
 0x54c   : > { %4999 = dma.vmem_to_hbm [thread:$0]  (%p5192_p5), %s6544_s22, 16, %s6542_s26, %s2770_s10  }
 0x54d PF: > { %p5005_p1 = scmp.ge.s32.totalorder %s5103_s30, 2  ;;  %s2794_s25 = sand.u32 1, %s5091_s27  }
 0x54e   : > { %s2795_s12 = scalar_lea.sflag [#allocation3], %s2794_s25 }
 0x54f   : > { %p5002_p2 = pnand %p5005_p1, %p5196_p6 }
 0x551   : > { %5086 = dma.done.wait (!%p5002_p2), %s2795_s12, 16  }
 0x552   : > { %5088 = vsyncadd (!%p5002_p2), %s2795_s12, 4294967280  ;;  %p18_p3 = scmp.ge.s32.totalorder %s5179_s11, 4   ;;  %s6595_s27 = smov %s5095_s28 }
 0x553   : > { %s6596_s28 = smov %s5099_s29  ;;  %s6597_s29 = smov %s5190_s14 }
 0x554   : > { %s6598_s30 = smov %s5179_s11  ;;  %20 = sbr.rel (!%p18_p3) target bundleno = 3 (0x3), region = 112 }
 0x55b   :  { %2799 = vsyncpa [#allocation3], 1 }
 0x55c   :  { %2801 = vsyncpa [#allocation3 + $0x1], 1 }

</bundles_post_ra>
